<compile_context>
chip_gen: v7x
topology: tpu7x:2x2x1
jax: 0.10.0
libtpu: 0.0.40
codegen_flags: <defaults>
</compile_context>

<pallas_src>
import functools

import jax
import jax.numpy as jnp
import numpy as np
from jax.experimental import pallas as pl
from jax.experimental.pallas import tpu as pltpu

EPS = 1e-5        # BatchNorm2d default eps
SLOPE = 0.2       # LeakyReLU(0.2) as in DIP's act('LeakyReLU')
LANES = 128       # lane-pad channel dims to this (dense stores / MXU output columns)


# ---------------------------------------------------------------------------
# Fused Pallas kernel: conv(s2,kxk)+BN+LReLU  ->  conv(s1,kxk)+BN+LReLU
# ---------------------------------------------------------------------------
def _bn_act(acc, gamma, beta, inv_r, eps, slope):
    """Training-mode BatchNorm via one-pass sum / sum-of-squares over rows + LeakyReLU."""
    s1 = jnp.sum(acc, axis=0, keepdims=True)
    s2 = jnp.sum(acc * acc, axis=0, keepdims=True)
    mean = s1 * inv_r
    var = jnp.maximum(s2 * inv_r - mean * mean, 0.0)       # biased var (PyTorch fwd)
    y = (acc - mean) * jax.lax.rsqrt(var + eps) * gamma + beta
    return jnp.where(y >= 0, y, slope * y)


def _encoder_block_kernel(xr_ref, w1_ref, g1_ref, b1_ref, w2_ref, g2_ref, b2_ref,
                          o_ref, pbuf_ref, *, N, Ho, Wo, Q, K, pad_width, reflect,
                          eps, slope):
    R = N * Ho * Wo
    inv_r = 1.0 / R
    COP = o_ref.shape[-1]
    p = pad_width

    # ---- conv1: stride-2 KxK conv, pre-folded (host space-to-depth) into a stride-1
    #      QxQ conv.  Q*Q shifted-window matmuls accumulated in f32 (no im2col slab).
    xr = xr_ref[...].astype(jnp.float32)          # (N, Hr, Wr, C1P); bf16 in HBM
    c1 = xr.shape[-1]
    acc = jnp.zeros((R, COP), jnp.float32)
    for qy in range(Q):
        for qx in range(Q):
            win = xr[:, qy:qy + Ho, qx:qx + Wo, :].reshape(R, c1).astype(jnp.bfloat16)
            acc = acc + jnp.dot(win, w1_ref[qy * Q + qx],
                                preferred_element_type=jnp.float32)
    # conv bias omitted: exactly cancelled by the training-mode BN mean subtraction.
    y = _bn_act(acc, g1_ref[...], b1_ref[...], inv_r, eps, slope)

    # ---- pad the VMEM-resident intermediate for conv2 (reflection / zero), in-kernel ----
    pbuf_ref[...] = jnp.zeros(pbuf_ref.shape, jnp.float32)    # also serves as 'zero' pad
    pbuf_ref[:, p:p + Ho, p:p + Wo, :] = y.reshape(N, Ho, Wo, COP)
    if reflect and p > 0:
        for d in range(1, p + 1):      # rows (top/bottom), center columns only
            pbuf_ref[:, p - d:p - d + 1, p:p + Wo, :] = \
                pbuf_ref[:, p + d:p + d + 1, p:p + Wo, :]
            pbuf_ref[:, p + Ho - 1 + d:p + Ho + d, p:p + Wo, :] = \
                pbuf_ref[:, p + Ho - 1 - d:p + Ho - d, p:p + Wo, :]
        for d in range(1, p + 1):      # cols (left/right), all rows -> fills corners too
            pbuf_ref[:, :, p - d:p - d + 1, :] = pbuf_ref[:, :, p + d:p + d + 1, :]
            pbuf_ref[:, :, p + Wo - 1 + d:p + Wo + d, :] = \
                pbuf_ref[:, :, p + Wo - 1 - d:p + Wo - d, :]

    # ---- conv2: stride-1 KxK conv as K*K shifted-window matmuls ----
    acc2 = jnp.zeros((R, COP), jnp.float32)
    for ky in range(K):
        for kx in range(K):
            win = pbuf_ref[:, ky:ky + Ho, kx:kx + Wo, :]
            win = win.reshape(R, COP).astype(jnp.bfloat16)
            acc2 = acc2 + jnp.dot(win, w2_ref[ky * K + kx],
                                  preferred_element_type=jnp.float32)
    o_ref[...] = _bn_act(acc2, g2_ref[...], b2_ref[...], inv_r, eps, slope)


# ---------------------------------------------------------------------------
# Host-side weight / parameter packing (layout glue only)
# ---------------------------------------------------------------------------
def _pack_conv1_weights(w1, K, Q, cin, c1p, cop):
    """(Cout,Cin,K,K) stride-2 weights -> (Q*Q, C1P, COP) taps of the space-to-depth-
    folded stride-1 conv; zero-padded to lane-dense contraction / output dims."""
    cout = w1.shape[0]
    wr = jnp.zeros((Q * Q, c1p, cop), jnp.float32)
    for qy in range(Q):
        for qx in range(Q):
            for ry in range(2):
                for rx in range(2):
                    ky, kx = 2 * qy + ry, 2 * qx + rx
                    if ky < K and kx < K:
                        blk = jnp.transpose(w1[:, :, ky, kx], (1, 0))   # (Cin, Cout)
                        wr = wr.at[qy * Q + qx,
                                   (ry * 2 + rx) * cin:(ry * 2 + rx + 1) * cin,
                                   :cout].set(blk)
    return wr.astype(jnp.bfloat16)


def _pack_conv2_weights(w2, K, cop):
    """(Cout,Cin,K,K) stride-1 weights -> (K*K, COP, COP) taps, zero-padded."""
    cout, cin = w2.shape[0], w2.shape[1]
    wr = jnp.zeros((K * K, cop, cop), jnp.float32)
    for ky in range(K):
        for kx in range(K):
            wr = wr.at[ky * K + kx, :cin, :cout].set(
                jnp.transpose(w2[:, :, ky, kx], (1, 0)))
    return wr.astype(jnp.bfloat16)


def _pad_lanes(v, cop):
    return jnp.zeros((1, cop), jnp.float32).at[0, :v.shape[0]].set(v)


# ---------------------------------------------------------------------------
# Public forward wrapper (NCHW in / NCHW out, like the PyTorch module)
# ---------------------------------------------------------------------------
def encoder_block_forward(x_nchw, params, *, kernel_size, pad="reflection"):
    # TODO(synk): only downsample_mode='stride' and act_fun='LeakyReLU' are implemented;
    # the avg/max/Lanczos downsampler variants of DIP's conv() are not translated.
    K = kernel_size
    p = (K - 1) // 2
    reflect = pad == "reflection"
    pad_mode = "reflect" if reflect else "constant"

    x = jnp.transpose(x_nchw, (0, 2, 3, 1)).astype(jnp.float32)      # NCHW -> NHWC
    N, H, W, Cin = x.shape
    Cout = params["w1"].shape[0]
    COP = ((Cout + LANES - 1) // LANES) * LANES
    C1P = ((4 * Cin + LANES - 1) // LANES) * LANES

    # Host layout glue (cheap, ~1.3x copy): pad for conv1, fold stride 2 via space-to-
    # depth so in-kernel windows are contiguous.  No im2col / K^2 patch expansion.
    xp = jnp.pad(x, ((0, 0), (p, p), (p, p), (0, 0)), mode=pad_mode) if p > 0 else x
    Hp, Wp = H + 2 * p, W + 2 * p
    Ho, Wo = (Hp - K) // 2 + 1, (Wp - K) // 2 + 1
    if Hp % 2 or Wp % 2:   # make even for the 2x2 fold; extra rows/cols only hit zero taps
        xp = jnp.pad(xp, ((0, 0), (0, Hp % 2), (0, Wp % 2), (0, 0)))
        Hp, Wp = Hp + Hp % 2, Wp + Wp % 2
    Hr, Wr = Hp // 2, Wp // 2
    xr = xp.reshape(N, Hr, 2, Wr, 2, Cin).transpose(0, 1, 3, 2, 4, 5)
    xr = xr.reshape(N, Hr, Wr, 4 * Cin)
    xr = jnp.pad(xr, ((0, 0), (0, 0), (0, 0), (0, C1P - 4 * Cin)))   # lane-dense contraction
    xr = xr.astype(jnp.bfloat16)                                      # bf16 MXU operand

    Q = (K + 1) // 2
    w1p = _pack_conv1_weights(params["w1"], K, Q, Cin, C1P, COP)
    w2p = _pack_conv2_weights(params["w2"], K, COP)
    g1 = _pad_lanes(params["bn1_g"], COP)
    b1 = _pad_lanes(params["bn1_b"], COP)
    g2 = _pad_lanes(params["bn2_g"], COP)
    b2 = _pad_lanes(params["bn2_b"], COP)

    R = N * Ho * Wo
    kern = functools.partial(_encoder_block_kernel, N=N, Ho=Ho, Wo=Wo, Q=Q, K=K,
                             pad_width=p, reflect=reflect, eps=EPS, slope=SLOPE)
    # Single fused, grid-less call: every operand and the intermediate fit in VMEM at
    # these shapes, so there is zero inter-stage HBM traffic.  For large N*H*W this
    # should become a row-tiled grid with a two-phase (sum / normalize) BatchNorm.
    out2d = pl.pallas_call(
        kern,
        out_shape=jax.ShapeDtypeStruct((R, COP), jnp.float32),
        in_specs=[pl.BlockSpec(memory_space=pltpu.MemorySpace.VMEM)] * 7,
        out_specs=pl.BlockSpec(memory_space=pltpu.MemorySpace.VMEM),
        scratch_shapes=[pltpu.VMEM((N, Ho + 2 * p, Wo + 2 * p, COP), jnp.float32)],
        compiler_params=pltpu.CompilerParams(vmem_limit_bytes=64 * 1024 * 1024),
    )(xr, w1p, g1, b1, w2p, g2, b2)

    out = out2d[:, :Cout].reshape(N, Ho, Wo, Cout)
    return jnp.transpose(out, (0, 3, 1, 2))                           # NHWC -> NCHW


# ---------------------------------------------------------------------------
# Pure-JAX reference (PyTorch-faithful) for correctness checks
# ---------------------------------------------------------------------------
def _bn_ref(x, g, b):
    mean = jnp.mean(x, axis=(0, 1, 2), keepdims=True)
    var = jnp.mean((x - mean) ** 2, axis=(0, 1, 2), keepdims=True)
    return (x - mean) * jax.lax.rsqrt(var + EPS) * g.reshape(1, 1, 1, -1) \
        + b.reshape(1, 1, 1, -1)


def _conv_ref(x, w_oihw, bias, pad_mode, stride):
    K = w_oihw.shape[-1]
    p = (K - 1) // 2
    xp = jnp.pad(x, ((0, 0), (p, p), (p, p), (0, 0)), mode=pad_mode) if p > 0 else x
    y = jax.lax.conv_general_dilated(
        xp, jnp.transpose(w_oihw, (2, 3, 1, 0)), window_strides=(stride, stride),
        padding="VALID", dimension_numbers=("NHWC", "HWIO", "NHWC"))
    return y + bias.reshape(1, 1, 1, -1)


def encoder_block_ref(x_nchw, params, *, kernel_size, pad, quantize=False):
    """Pure-JAX reference.  quantize=True pre-rounds conv operands to bf16 (mirrors the
    kernel's bf16 MXU operands) while keeping all other math in f32."""
    pad_mode = "reflect" if pad == "reflection" else "constant"
    q = (lambda v: v.astype(jnp.bfloat16).astype(jnp.float32)) if quantize else (lambda v: v)
    lrelu = lambda v: jnp.where(v >= 0, v, SLOPE * v)
    y = jnp.transpose(x_nchw, (0, 2, 3, 1)).astype(jnp.float32)
    y = _conv_ref(q(y), q(params["w1"]), params["b1"], pad_mode, stride=2)
    y = lrelu(_bn_ref(y, params["bn1_g"], params["bn1_b"]))
    y = _conv_ref(q(y), q(params["w2"]), params["b2"], pad_mode, stride=1)
    y = lrelu(_bn_ref(y, params["bn2_g"], params["bn2_b"]))
    return jnp.transpose(y, (0, 3, 1, 2))


# ---------------------------------------------------------------------------
# Deterministic parameter init (PyTorch-like shapes / kaiming-uniform-ish)
# ---------------------------------------------------------------------------
def init_params(key, in_ch, out_ch, k):
    ks = jax.random.split(key, 8)

    def conv_init(kw, kb, cin, cout, ksize):
        bound = 1.0 / np.sqrt(cin * ksize * ksize)
        w = jax.random.uniform(kw, (cout, cin, ksize, ksize), jnp.float32, -bound, bound)
        b = jax.random.uniform(kb, (cout,), jnp.float32, -bound, bound)
        return w, b

    def bn_init(kg, kb, c):
        g = 1.0 + 0.1 * jax.random.normal(kg, (c,), jnp.float32)
        b = 0.1 * jax.random.normal(kb, (c,), jnp.float32)
        return g, b

    prm = {}
    prm["w1"], prm["b1"] = conv_init(ks[0], ks[1], in_ch, out_ch, k)
    prm["bn1_g"], prm["bn1_b"] = bn_init(ks[2], ks[3], out_ch)
    prm["w2"], prm["b2"] = conv_init(ks[4], ks[5], out_ch, out_ch, k)
    prm["bn2_g"], prm["bn2_b"] = bn_init(ks[6], ks[7], out_ch)
    return prm


if __name__ == "__main__":
    # EncoderBlock(in_channel=4, out_channel=4, kernel_size=3, bias=True,
    #              pad='reflection', act_fun='LeakyReLU', downsample_mode='stride')
    N, Cin, H, W = 2, 4, 16, 16
    Cout = 4
    kernel_size = 3
    pad = "reflection"

    key = jax.random.PRNGKey(0)
    k_x, k_p = jax.random.split(key)
    x = jax.random.normal(k_x, (N, Cin, H, W), jnp.float32)
    params = init_params(k_p, Cin, Cout, kernel_size)

    fwd = jax.jit(functools.partial(encoder_block_forward,
                                    kernel_size=kernel_size, pad=pad))
    out = jax.block_until_ready(fwd(x, params))
    assert out.shape == (N, Cout, H // 2, W // 2), out.shape

    # Check 1: tight agreement with a reference whose conv operands are pre-rounded to
    # bf16 (mirrors the kernel's bf16 MXU operands; accumulation/BN in f32 in both).
    ref_q = jax.block_until_ready(
        encoder_block_ref(x, params, kernel_size=kernel_size, pad=pad, quantize=True))
    np.testing.assert_allclose(np.asarray(out), np.asarray(ref_q), rtol=5e-3, atol=5e-3)

    # Check 2: faithful f32 PyTorch semantics; tolerance reflects bf16 conv operands.
    ref_f32 = jax.block_until_ready(
        encoder_block_ref(x, params, kernel_size=kernel_size, pad=pad, quantize=False))
    np.testing.assert_allclose(np.asarray(out), np.asarray(ref_f32), rtol=5e-2, atol=5e-2)

    print("KERNEL_OK")
</pallas_src>

<mosaic_0001>
module attributes {stable_mosaic.version = 11 : i64} {
  func.func @_encoder_block_kernel(%arg0: memref<2x9x9x128xbf16, #tpu.memory_space<vmem>>, %arg1: memref<4x128x128xbf16, #tpu.memory_space<vmem>>, %arg2: memref<1x128xf32, #tpu.memory_space<vmem>>, %arg3: memref<1x128xf32, #tpu.memory_space<vmem>>, %arg4: memref<9x128x128xbf16, #tpu.memory_space<vmem>>, %arg5: memref<1x128xf32, #tpu.memory_space<vmem>>, %arg6: memref<1x128xf32, #tpu.memory_space<vmem>>, %arg7: memref<128x128xf32, #tpu.memory_space<vmem>>, %arg8: memref<2x10x10x128xf32, #tpu.memory_space<vmem>>) attributes {dimension_semantics = [], scalar_prefetch = 0 : i64, scratch_operands = 1 : i64, tpu.core_type = #tpu.core_type<tc>} {
    %c0 = arith.constant 0 : index
    %c0_0 = arith.constant 0 : index
    %c0_1 = arith.constant 0 : index
    %c0_2 = arith.constant 0 : index
    %0 = vector.load %arg0[%c0, %c0_0, %c0_1, %c0_2] : memref<2x9x9x128xbf16, #tpu.memory_space<vmem>>, vector<2x9x9x128xbf16>
    %1 = arith.extf %0 : vector<2x9x9x128xbf16> to vector<2x9x9x128xf32>
    %cst = arith.constant 0.000000e+00 : f32
    %2 = vector.broadcast %cst : f32 to vector<128x128xf32>
    %3 = vector.extract_strided_slice %1 {offsets = [0, 0, 0, 0], sizes = [2, 8, 8, 128], strides = [1, 1, 1, 1]} : vector<2x9x9x128xf32> to vector<2x8x8x128xf32>
    %4 = vector.shape_cast %3 : vector<2x8x8x128xf32> to vector<128x128xf32>
    %5 = arith.truncf %4 : vector<128x128xf32> to vector<128x128xbf16>
    %c0_3 = arith.constant 0 : index
    %c0_4 = arith.constant 0 : index
    %c0_5 = arith.constant 0 : index
    %6 = vector.load %arg1[%c0_3, %c0_4, %c0_5] : memref<4x128x128xbf16, #tpu.memory_space<vmem>>, vector<1x128x128xbf16>
    %7 = vector.shape_cast %6 : vector<1x128x128xbf16> to vector<128x128xbf16>
    %cst_6 = arith.constant dense<0.000000e+00> : vector<128x128xf32>
    %8 = tpu.matmul %5, %7, %cst_6 {dimension_numbers = #tpu.dot_dimension_numbers<[1], [0], [0], [1], [0, 0, 1, 1], [], []>} : vector<128x128xbf16>, vector<128x128xbf16>, vector<128x128xf32> -> vector<128x128xf32>
    %9 = arith.addf %2, %8 : vector<128x128xf32>
    %10 = vector.extract_strided_slice %1 {offsets = [0, 0, 1, 0], sizes = [2, 8, 8, 128], strides = [1, 1, 1, 1]} : vector<2x9x9x128xf32> to vector<2x8x8x128xf32>
    %11 = vector.shape_cast %10 : vector<2x8x8x128xf32> to vector<128x128xf32>
    %12 = arith.truncf %11 : vector<128x128xf32> to vector<128x128xbf16>
    %c1 = arith.constant 1 : index
    %c0_7 = arith.constant 0 : index
    %c0_8 = arith.constant 0 : index
    %13 = vector.load %arg1[%c1, %c0_7, %c0_8] : memref<4x128x128xbf16, #tpu.memory_space<vmem>>, vector<1x128x128xbf16>
    %14 = vector.shape_cast %13 : vector<1x128x128xbf16> to vector<128x128xbf16>
    %cst_9 = arith.constant dense<0.000000e+00> : vector<128x128xf32>
    %15 = tpu.matmul %12, %14, %cst_9 {dimension_numbers = #tpu.dot_dimension_numbers<[1], [0], [0], [1], [0, 0, 1, 1], [], []>} : vector<128x128xbf16>, vector<128x128xbf16>, vector<128x128xf32> -> vector<128x128xf32>
    %16 = arith.addf %9, %15 : vector<128x128xf32>
    %17 = vector.extract_strided_slice %1 {offsets = [0, 1, 0, 0], sizes = [2, 8, 8, 128], strides = [1, 1, 1, 1]} : vector<2x9x9x128xf32> to vector<2x8x8x128xf32>
    %18 = vector.shape_cast %17 : vector<2x8x8x128xf32> to vector<128x128xf32>
    %19 = arith.truncf %18 : vector<128x128xf32> to vector<128x128xbf16>
    %c2 = arith.constant 2 : index
    %c0_10 = arith.constant 0 : index
    %c0_11 = arith.constant 0 : index
    %20 = vector.load %arg1[%c2, %c0_10, %c0_11] : memref<4x128x128xbf16, #tpu.memory_space<vmem>>, vector<1x128x128xbf16>
    %21 = vector.shape_cast %20 : vector<1x128x128xbf16> to vector<128x128xbf16>
    %cst_12 = arith.constant dense<0.000000e+00> : vector<128x128xf32>
    %22 = tpu.matmul %19, %21, %cst_12 {dimension_numbers = #tpu.dot_dimension_numbers<[1], [0], [0], [1], [0, 0, 1, 1], [], []>} : vector<128x128xbf16>, vector<128x128xbf16>, vector<128x128xf32> -> vector<128x128xf32>
    %23 = arith.addf %16, %22 : vector<128x128xf32>
    %24 = vector.extract_strided_slice %1 {offsets = [0, 1, 1, 0], sizes = [2, 8, 8, 128], strides = [1, 1, 1, 1]} : vector<2x9x9x128xf32> to vector<2x8x8x128xf32>
    %25 = vector.shape_cast %24 : vector<2x8x8x128xf32> to vector<128x128xf32>
    %26 = arith.truncf %25 : vector<128x128xf32> to vector<128x128xbf16>
    %c3 = arith.constant 3 : index
    %c0_13 = arith.constant 0 : index
    %c0_14 = arith.constant 0 : index
    %27 = vector.load %arg1[%c3, %c0_13, %c0_14] : memref<4x128x128xbf16, #tpu.memory_space<vmem>>, vector<1x128x128xbf16>
    %28 = vector.shape_cast %27 : vector<1x128x128xbf16> to vector<128x128xbf16>
    %cst_15 = arith.constant dense<0.000000e+00> : vector<128x128xf32>
    %29 = tpu.matmul %26, %28, %cst_15 {dimension_numbers = #tpu.dot_dimension_numbers<[1], [0], [0], [1], [0, 0, 1, 1], [], []>} : vector<128x128xbf16>, vector<128x128xbf16>, vector<128x128xf32> -> vector<128x128xf32>
    %30 = arith.addf %23, %29 : vector<128x128xf32>
    %c0_16 = arith.constant 0 : index
    %c0_17 = arith.constant 0 : index
    %31 = vector.load %arg2[%c0_16, %c0_17] : memref<1x128xf32, #tpu.memory_space<vmem>>, vector<1x128xf32>
    %c0_18 = arith.constant 0 : index
    %c0_19 = arith.constant 0 : index
    %32 = vector.load %arg3[%c0_18, %c0_19] : memref<1x128xf32, #tpu.memory_space<vmem>>, vector<1x128xf32>
    %cst_20 = arith.constant dense<0.000000e+00> : vector<128xf32>
    %33 = vector.multi_reduction <add>, %30, %cst_20 [0] : vector<128x128xf32> to vector<128xf32>
    %34 = vector.shape_cast %33 : vector<128xf32> to vector<1x128xf32>
    %35 = arith.mulf %30, %30 : vector<128x128xf32>
    %cst_21 = arith.constant dense<0.000000e+00> : vector<128xf32>
    %36 = vector.multi_reduction <add>, %35, %cst_21 [0] : vector<128x128xf32> to vector<128xf32>
    %37 = vector.shape_cast %36 : vector<128xf32> to vector<1x128xf32>
    %cst_22 = arith.constant 7.812500e-03 : f32
    %38 = vector.broadcast %cst_22 : f32 to vector<1x128xf32>
    %39 = arith.mulf %34, %38 : vector<1x128xf32>
    %cst_23 = arith.constant 7.812500e-03 : f32
    %40 = vector.broadcast %cst_23 : f32 to vector<1x128xf32>
    %41 = arith.mulf %37, %40 : vector<1x128xf32>
    %42 = arith.mulf %39, %39 : vector<1x128xf32>
    %43 = arith.subf %41, %42 : vector<1x128xf32>
    %cst_24 = arith.constant 0.000000e+00 : f32
    %44 = vector.broadcast %cst_24 : f32 to vector<1x128xf32>
    %45 = arith.maximumf %43, %44 : vector<1x128xf32>
    %46 = vector.broadcast %39 : vector<1x128xf32> to vector<128x128xf32>
    %47 = arith.subf %30, %46 : vector<128x128xf32>
    %cst_25 = arith.constant 9.99999974E-6 : f32
    %48 = vector.broadcast %cst_25 : f32 to vector<1x128xf32>
    %49 = arith.addf %45, %48 : vector<1x128xf32>
    %50 = math.rsqrt %49 : vector<1x128xf32>
    %51 = vector.broadcast %50 : vector<1x128xf32> to vector<128x128xf32>
    %52 = arith.mulf %47, %51 : vector<128x128xf32>
    %53 = vector.broadcast %31 : vector<1x128xf32> to vector<128x128xf32>
    %54 = arith.mulf %52, %53 : vector<128x128xf32>
    %55 = vector.broadcast %32 : vector<1x128xf32> to vector<128x128xf32>
    %56 = arith.addf %54, %55 : vector<128x128xf32>
    %cst_26 = arith.constant 0.000000e+00 : f32
    %57 = vector.broadcast %cst_26 : f32 to vector<128x128xf32>
    %58 = arith.cmpf oge, %56, %57 : vector<128x128xf32>
    %cst_27 = arith.constant 2.000000e-01 : f32
    %59 = vector.broadcast %cst_27 : f32 to vector<128x128xf32>
    %60 = arith.mulf %59, %56 : vector<128x128xf32>
    %61 = arith.select %58, %56, %60 : vector<128x128xi1>, vector<128x128xf32>
    %cst_28 = arith.constant 0.000000e+00 : f32
    %62 = vector.broadcast %cst_28 : f32 to vector<2x10x10x128xf32>
    %c0_29 = arith.constant 0 : index
    %c0_30 = arith.constant 0 : index
    %c0_31 = arith.constant 0 : index
    %c0_32 = arith.constant 0 : index
    %63 = vector.load %arg8[%c0_29, %c0_30, %c0_31, %c0_32] : memref<2x10x10x128xf32, #tpu.memory_space<vmem>>, vector<2x10x10x128xf32>
    tpu.vector_store %arg8[%c0_29, %c0_30, %c0_31, %c0_32], %62 {strides = array<i32>} : memref<2x10x10x128xf32, #tpu.memory_space<vmem>>, vector<2x10x10x128xf32>,
    %64 = vector.shape_cast %61 : vector<128x128xf32> to vector<2x8x8x128xf32>
    %c0_33 = arith.constant 0 : index
    %c1_34 = arith.constant 1 : index
    %c1_35 = arith.constant 1 : index
    %c0_36 = arith.constant 0 : index
    %65 = vector.load %arg8[%c0_33, %c1_34, %c1_35, %c0_36] : memref<2x10x10x128xf32, #tpu.memory_space<vmem>>, vector<2x8x8x128xf32>
    tpu.vector_store %arg8[%c0_33, %c1_34, %c1_35, %c0_36], %64 {strides = array<i32>} : memref<2x10x10x128xf32, #tpu.memory_space<vmem>>, vector<2x8x8x128xf32>,
    %c0_37 = arith.constant 0 : index
    %c2_38 = arith.constant 2 : index
    %c1_39 = arith.constant 1 : index
    %c0_40 = arith.constant 0 : index
    %66 = vector.load %arg8[%c0_37, %c2_38, %c1_39, %c0_40] : memref<2x10x10x128xf32, #tpu.memory_space<vmem>>, vector<2x1x8x128xf32>
    %c0_41 = arith.constant 0 : index
    %c0_42 = arith.constant 0 : index
    %c1_43 = arith.constant 1 : index
    %c0_44 = arith.constant 0 : index
    %67 = vector.load %arg8[%c0_41, %c0_42, %c1_43, %c0_44] : memref<2x10x10x128xf32, #tpu.memory_space<vmem>>, vector<2x1x8x128xf32>
    tpu.vector_store %arg8[%c0_41, %c0_42, %c1_43, %c0_44], %66 {strides = array<i32>} : memref<2x10x10x128xf32, #tpu.memory_space<vmem>>, vector<2x1x8x128xf32>,
    %c0_45 = arith.constant 0 : index
    %c7 = arith.constant 7 : index
    %c1_46 = arith.constant 1 : index
    %c0_47 = arith.constant 0 : index
    %68 = vector.load %arg8[%c0_45, %c7, %c1_46, %c0_47] : memref<2x10x10x128xf32, #tpu.memory_space<vmem>>, vector<2x1x8x128xf32>
    %c0_48 = arith.constant 0 : index
    %c9 = arith.constant 9 : index
    %c1_49 = arith.constant 1 : index
    %c0_50 = arith.constant 0 : index
    %69 = vector.load %arg8[%c0_48, %c9, %c1_49, %c0_50] : memref<2x10x10x128xf32, #tpu.memory_space<vmem>>, vector<2x1x8x128xf32>
    tpu.vector_store %arg8[%c0_48, %c9, %c1_49, %c0_50], %68 {strides = array<i32>} : memref<2x10x10x128xf32, #tpu.memory_space<vmem>>, vector<2x1x8x128xf32>,
    %c0_51 = arith.constant 0 : index
    %c0_52 = arith.constant 0 : index
    %c2_53 = arith.constant 2 : index
    %c0_54 = arith.constant 0 : index
    %70 = vector.load %arg8[%c0_51, %c0_52, %c2_53, %c0_54] : memref<2x10x10x128xf32, #tpu.memory_space<vmem>>, vector<2x10x1x128xf32>
    %c0_55 = arith.constant 0 : index
    %c0_56 = arith.constant 0 : index
    %c0_57 = arith.constant 0 : index
    %c0_58 = arith.constant 0 : index
    %71 = vector.load %arg8[%c0_55, %c0_56, %c0_57, %c0_58] : memref<2x10x10x128xf32, #tpu.memory_space<vmem>>, vector<2x10x1x128xf32>
    tpu.vector_store %arg8[%c0_55, %c0_56, %c0_57, %c0_58], %70 {strides = array<i32>} : memref<2x10x10x128xf32, #tpu.memory_space<vmem>>, vector<2x10x1x128xf32>,
    %c0_59 = arith.constant 0 : index
    %c0_60 = arith.constant 0 : index
    %c7_61 = arith.constant 7 : index
    %c0_62 = arith.constant 0 : index
    %72 = vector.load %arg8[%c0_59, %c0_60, %c7_61, %c0_62] : memref<2x10x10x128xf32, #tpu.memory_space<vmem>>, vector<2x10x1x128xf32>
    %c0_63 = arith.constant 0 : index
    %c0_64 = arith.constant 0 : index
    %c9_65 = arith.constant 9 : index
    %c0_66 = arith.constant 0 : index
    %73 = vector.load %arg8[%c0_63, %c0_64, %c9_65, %c0_66] : memref<2x10x10x128xf32, #tpu.memory_space<vmem>>, vector<2x10x1x128xf32>
    tpu.vector_store %arg8[%c0_63, %c0_64, %c9_65, %c0_66], %72 {strides = array<i32>} : memref<2x10x10x128xf32, #tpu.memory_space<vmem>>, vector<2x10x1x128xf32>,
    %cst_67 = arith.constant 0.000000e+00 : f32
    %74 = vector.broadcast %cst_67 : f32 to vector<128x128xf32>
    %c0_68 = arith.constant 0 : index
    %c0_69 = arith.constant 0 : index
    %c0_70 = arith.constant 0 : index
    %c0_71 = arith.constant 0 : index
    %75 = vector.load %arg8[%c0_68, %c0_69, %c0_70, %c0_71] : memref<2x10x10x128xf32, #tpu.memory_space<vmem>>, vector<2x8x8x128xf32>
    %76 = vector.shape_cast %75 : vector<2x8x8x128xf32> to vector<128x128xf32>
    %77 = arith.truncf %76 : vector<128x128xf32> to vector<128x128xbf16>
    %c0_72 = arith.constant 0 : index
    %c0_73 = arith.constant 0 : index
    %c0_74 = arith.constant 0 : index
    %78 = vector.load %arg4[%c0_72, %c0_73, %c0_74] : memref<9x128x128xbf16, #tpu.memory_space<vmem>>, vector<1x128x128xbf16>
    %79 = vector.shape_cast %78 : vector<1x128x128xbf16> to vector<128x128xbf16>
    %cst_75 = arith.constant dense<0.000000e+00> : vector<128x128xf32>
    %80 = tpu.matmul %77, %79, %cst_75 {dimension_numbers = #tpu.dot_dimension_numbers<[1], [0], [0], [1], [0, 0, 1, 1], [], []>} : vector<128x128xbf16>, vector<128x128xbf16>, vector<128x128xf32> -> vector<128x128xf32>
    %81 = arith.addf %74, %80 : vector<128x128xf32>
    %c0_76 = arith.constant 0 : index
    %c0_77 = arith.constant 0 : index
    %c1_78 = arith.constant 1 : index
    %c0_79 = arith.constant 0 : index
    %82 = vector.load %arg8[%c0_76, %c0_77, %c1_78, %c0_79] : memref<2x10x10x128xf32, #tpu.memory_space<vmem>>, vector<2x8x8x128xf32>
    %83 = vector.shape_cast %82 : vector<2x8x8x128xf32> to vector<128x128xf32>
    %84 = arith.truncf %83 : vector<128x128xf32> to vector<128x128xbf16>
    %c1_80 = arith.constant 1 : index
    %c0_81 = arith.constant 0 : index
    %c0_82 = arith.constant 0 : index
    %85 = vector.load %arg4[%c1_80, %c0_81, %c0_82] : memref<9x128x128xbf16, #tpu.memory_space<vmem>>, vector<1x128x128xbf16>
    %86 = vector.shape_cast %85 : vector<1x128x128xbf16> to vector<128x128xbf16>
    %cst_83 = arith.constant dense<0.000000e+00> : vector<128x128xf32>
    %87 = tpu.matmul %84, %86, %cst_83 {dimension_numbers = #tpu.dot_dimension_numbers<[1], [0], [0], [1], [0, 0, 1, 1], [], []>} : vector<128x128xbf16>, vector<128x128xbf16>, vector<128x128xf32> -> vector<128x128xf32>
    %88 = arith.addf %81, %87 : vector<128x128xf32>
    %c0_84 = arith.constant 0 : index
    %c0_85 = arith.constant 0 : index
    %c2_86 = arith.constant 2 : index
    %c0_87 = arith.constant 0 : index
    %89 = vector.load %arg8[%c0_84, %c0_85, %c2_86, %c0_87] : memref<2x10x10x128xf32, #tpu.memory_space<vmem>>, vector<2x8x8x128xf32>
    %90 = vector.shape_cast %89 : vector<2x8x8x128xf32> to vector<128x128xf32>
    %91 = arith.truncf %90 : vector<128x128xf32> to vector<128x128xbf16>
    %c2_88 = arith.constant 2 : index
    %c0_89 = arith.constant 0 : index
    %c0_90 = arith.constant 0 : index
    %92 = vector.load %arg4[%c2_88, %c0_89, %c0_90] : memref<9x128x128xbf16, #tpu.memory_space<vmem>>, vector<1x128x128xbf16>
    %93 = vector.shape_cast %92 : vector<1x128x128xbf16> to vector<128x128xbf16>
    %cst_91 = arith.constant dense<0.000000e+00> : vector<128x128xf32>
    %94 = tpu.matmul %91, %93, %cst_91 {dimension_numbers = #tpu.dot_dimension_numbers<[1], [0], [0], [1], [0, 0, 1, 1], [], []>} : vector<128x128xbf16>, vector<128x128xbf16>, vector<128x128xf32> -> vector<128x128xf32>
    %95 = arith.addf %88, %94 : vector<128x128xf32>
    %c0_92 = arith.constant 0 : index
    %c1_93 = arith.constant 1 : index
    %c0_94 = arith.constant 0 : index
    %c0_95 = arith.constant 0 : index
    %96 = vector.load %arg8[%c0_92, %c1_93, %c0_94, %c0_95] : memref<2x10x10x128xf32, #tpu.memory_space<vmem>>, vector<2x8x8x128xf32>
    %97 = vector.shape_cast %96 : vector<2x8x8x128xf32> to vector<128x128xf32>
    %98 = arith.truncf %97 : vector<128x128xf32> to vector<128x128xbf16>
    %c3_96 = arith.constant 3 : index
    %c0_97 = arith.constant 0 : index
    %c0_98 = arith.constant 0 : index
    %99 = vector.load %arg4[%c3_96, %c0_97, %c0_98] : memref<9x128x128xbf16, #tpu.memory_space<vmem>>, vector<1x128x128xbf16>
    %100 = vector.shape_cast %99 : vector<1x128x128xbf16> to vector<128x128xbf16>
    %cst_99 = arith.constant dense<0.000000e+00> : vector<128x128xf32>
    %101 = tpu.matmul %98, %100, %cst_99 {dimension_numbers = #tpu.dot_dimension_numbers<[1], [0], [0], [1], [0, 0, 1, 1], [], []>} : vector<128x128xbf16>, vector<128x128xbf16>, vector<128x128xf32> -> vector<128x128xf32>
    %102 = arith.addf %95, %101 : vector<128x128xf32>
    %c0_100 = arith.constant 0 : index
    %c1_101 = arith.constant 1 : index
    %c1_102 = arith.constant 1 : index
    %c0_103 = arith.constant 0 : index
    %103 = vector.load %arg8[%c0_100, %c1_101, %c1_102, %c0_103] : memref<2x10x10x128xf32, #tpu.memory_space<vmem>>, vector<2x8x8x128xf32>
    %104 = vector.shape_cast %103 : vector<2x8x8x128xf32> to vector<128x128xf32>
    %105 = arith.truncf %104 : vector<128x128xf32> to vector<128x128xbf16>
    %c4 = arith.constant 4 : index
    %c0_104 = arith.constant 0 : index
    %c0_105 = arith.constant 0 : index
    %106 = vector.load %arg4[%c4, %c0_104, %c0_105] : memref<9x128x128xbf16, #tpu.memory_space<vmem>>, vector<1x128x128xbf16>
    %107 = vector.shape_cast %106 : vector<1x128x128xbf16> to vector<128x128xbf16>
    %cst_106 = arith.constant dense<0.000000e+00> : vector<128x128xf32>
    %108 = tpu.matmul %105, %107, %cst_106 {dimension_numbers = #tpu.dot_dimension_numbers<[1], [0], [0], [1], [0, 0, 1, 1], [], []>} : vector<128x128xbf16>, vector<128x128xbf16>, vector<128x128xf32> -> vector<128x128xf32>
    %109 = arith.addf %102, %108 : vector<128x128xf32>
    %c0_107 = arith.constant 0 : index
    %c1_108 = arith.constant 1 : index
    %c2_109 = arith.constant 2 : index
    %c0_110 = arith.constant 0 : index
    %110 = vector.load %arg8[%c0_107, %c1_108, %c2_109, %c0_110] : memref<2x10x10x128xf32, #tpu.memory_space<vmem>>, vector<2x8x8x128xf32>
    %111 = vector.shape_cast %110 : vector<2x8x8x128xf32> to vector<128x128xf32>
    %112 = arith.truncf %111 : vector<128x128xf32> to vector<128x128xbf16>
    %c5 = arith.constant 5 : index
    %c0_111 = arith.constant 0 : index
    %c0_112 = arith.constant 0 : index
    %113 = vector.load %arg4[%c5, %c0_111, %c0_112] : memref<9x128x128xbf16, #tpu.memory_space<vmem>>, vector<1x128x128xbf16>
    %114 = vector.shape_cast %113 : vector<1x128x128xbf16> to vector<128x128xbf16>
    %cst_113 = arith.constant dense<0.000000e+00> : vector<128x128xf32>
    %115 = tpu.matmul %112, %114, %cst_113 {dimension_numbers = #tpu.dot_dimension_numbers<[1], [0], [0], [1], [0, 0, 1, 1], [], []>} : vector<128x128xbf16>, vector<128x128xbf16>, vector<128x128xf32> -> vector<128x128xf32>
    %116 = arith.addf %109, %115 : vector<128x128xf32>
    %c0_114 = arith.constant 0 : index
    %c2_115 = arith.constant 2 : index
    %c0_116 = arith.constant 0 : index
    %c0_117 = arith.constant 0 : index
    %117 = vector.load %arg8[%c0_114, %c2_115, %c0_116, %c0_117] : memref<2x10x10x128xf32, #tpu.memory_space<vmem>>, vector<2x8x8x128xf32>
    %118 = vector.shape_cast %117 : vector<2x8x8x128xf32> to vector<128x128xf32>
    %119 = arith.truncf %118 : vector<128x128xf32> to vector<128x128xbf16>
    %c6 = arith.constant 6 : index
    %c0_118 = arith.constant 0 : index
    %c0_119 = arith.constant 0 : index
    %120 = vector.load %arg4[%c6, %c0_118, %c0_119] : memref<9x128x128xbf16, #tpu.memory_space<vmem>>, vector<1x128x128xbf16>
    %121 = vector.shape_cast %120 : vector<1x128x128xbf16> to vector<128x128xbf16>
    %cst_120 = arith.constant dense<0.000000e+00> : vector<128x128xf32>
    %122 = tpu.matmul %119, %121, %cst_120 {dimension_numbers = #tpu.dot_dimension_numbers<[1], [0], [0], [1], [0, 0, 1, 1], [], []>} : vector<128x128xbf16>, vector<128x128xbf16>, vector<128x128xf32> -> vector<128x128xf32>
    %123 = arith.addf %116, %122 : vector<128x128xf32>
    %c0_121 = arith.constant 0 : index
    %c2_122 = arith.constant 2 : index
    %c1_123 = arith.constant 1 : index
    %c0_124 = arith.constant 0 : index
    %124 = vector.load %arg8[%c0_121, %c2_122, %c1_123, %c0_124] : memref<2x10x10x128xf32, #tpu.memory_space<vmem>>, vector<2x8x8x128xf32>
    %125 = vector.shape_cast %124 : vector<2x8x8x128xf32> to vector<128x128xf32>
    %126 = arith.truncf %125 : vector<128x128xf32> to vector<128x128xbf16>
    %c7_125 = arith.constant 7 : index
    %c0_126 = arith.constant 0 : index
    %c0_127 = arith.constant 0 : index
    %127 = vector.load %arg4[%c7_125, %c0_126, %c0_127] : memref<9x128x128xbf16, #tpu.memory_space<vmem>>, vector<1x128x128xbf16>
    %128 = vector.shape_cast %127 : vector<1x128x128xbf16> to vector<128x128xbf16>
    %cst_128 = arith.constant dense<0.000000e+00> : vector<128x128xf32>
    %129 = tpu.matmul %126, %128, %cst_128 {dimension_numbers = #tpu.dot_dimension_numbers<[1], [0], [0], [1], [0, 0, 1, 1], [], []>} : vector<128x128xbf16>, vector<128x128xbf16>, vector<128x128xf32> -> vector<128x128xf32>
    %130 = arith.addf %123, %129 : vector<128x128xf32>
    %c0_129 = arith.constant 0 : index
    %c2_130 = arith.constant 2 : index
    %c2_131 = arith.constant 2 : index
    %c0_132 = arith.constant 0 : index
    %131 = vector.load %arg8[%c0_129, %c2_130, %c2_131, %c0_132] : memref<2x10x10x128xf32, #tpu.memory_space<vmem>>, vector<2x8x8x128xf32>
    %132 = vector.shape_cast %131 : vector<2x8x8x128xf32> to vector<128x128xf32>
    %133 = arith.truncf %132 : vector<128x128xf32> to vector<128x128xbf16>
    %c8 = arith.constant 8 : index
    %c0_133 = arith.constant 0 : index
    %c0_134 = arith.constant 0 : index
    %134 = vector.load %arg4[%c8, %c0_133, %c0_134] : memref<9x128x128xbf16, #tpu.memory_space<vmem>>, vector<1x128x128xbf16>
    %135 = vector.shape_cast %134 : vector<1x128x128xbf16> to vector<128x128xbf16>
    %cst_135 = arith.constant dense<0.000000e+00> : vector<128x128xf32>
    %136 = tpu.matmul %133, %135, %cst_135 {dimension_numbers = #tpu.dot_dimension_numbers<[1], [0], [0], [1], [0, 0, 1, 1], [], []>} : vector<128x128xbf16>, vector<128x128xbf16>, vector<128x128xf32> -> vector<128x128xf32>
    %137 = arith.addf %130, %136 : vector<128x128xf32>
    %c0_136 = arith.constant 0 : index
    %c0_137 = arith.constant 0 : index
    %138 = vector.load %arg5[%c0_136, %c0_137] : memref<1x128xf32, #tpu.memory_space<vmem>>, vector<1x128xf32>
    %c0_138 = arith.constant 0 : index
    %c0_139 = arith.constant 0 : index
    %139 = vector.load %arg6[%c0_138, %c0_139] : memref<1x128xf32, #tpu.memory_space<vmem>>, vector<1x128xf32>
    %cst_140 = arith.constant dense<0.000000e+00> : vector<128xf32>
    %140 = vector.multi_reduction <add>, %137, %cst_140 [0] : vector<128x128xf32> to vector<128xf32>
    %141 = vector.shape_cast %140 : vector<128xf32> to vector<1x128xf32>
    %142 = arith.mulf %137, %137 : vector<128x128xf32>
    %cst_141 = arith.constant dense<0.000000e+00> : vector<128xf32>
    %143 = vector.multi_reduction <add>, %142, %cst_141 [0] : vector<128x128xf32> to vector<128xf32>
    %144 = vector.shape_cast %143 : vector<128xf32> to vector<1x128xf32>
    %cst_142 = arith.constant 7.812500e-03 : f32
    %145 = vector.broadcast %cst_142 : f32 to vector<1x128xf32>
    %146 = arith.mulf %141, %145 : vector<1x128xf32>
    %cst_143 = arith.constant 7.812500e-03 : f32
    %147 = vector.broadcast %cst_143 : f32 to vector<1x128xf32>
    %148 = arith.mulf %144, %147 : vector<1x128xf32>
    %149 = arith.mulf %146, %146 : vector<1x128xf32>
    %150 = arith.subf %148, %149 : vector<1x128xf32>
    %cst_144 = arith.constant 0.000000e+00 : f32
    %151 = vector.broadcast %cst_144 : f32 to vector<1x128xf32>
    %152 = arith.maximumf %150, %151 : vector<1x128xf32>
    %153 = vector.broadcast %146 : vector<1x128xf32> to vector<128x128xf32>
    %154 = arith.subf %137, %153 : vector<128x128xf32>
    %cst_145 = arith.constant 9.99999974E-6 : f32
    %155 = vector.broadcast %cst_145 : f32 to vector<1x128xf32>
    %156 = arith.addf %152, %155 : vector<1x128xf32>
    %157 = math.rsqrt %156 : vector<1x128xf32>
    %158 = vector.broadcast %157 : vector<1x128xf32> to vector<128x128xf32>
    %159 = arith.mulf %154, %158 : vector<128x128xf32>
    %160 = vector.broadcast %138 : vector<1x128xf32> to vector<128x128xf32>
    %161 = arith.mulf %159, %160 : vector<128x128xf32>
    %162 = vector.broadcast %139 : vector<1x128xf32> to vector<128x128xf32>
    %163 = arith.addf %161, %162 : vector<128x128xf32>
    %cst_146 = arith.constant 0.000000e+00 : f32
    %164 = vector.broadcast %cst_146 : f32 to vector<128x128xf32>
    %165 = arith.cmpf oge, %163, %164 : vector<128x128xf32>
    %cst_147 = arith.constant 2.000000e-01 : f32
    %166 = vector.broadcast %cst_147 : f32 to vector<128x128xf32>
    %167 = arith.mulf %166, %163 : vector<128x128xf32>
    %168 = arith.select %165, %163, %167 : vector<128x128xi1>, vector<128x128xf32>
    %c0_148 = arith.constant 0 : index
    %c0_149 = arith.constant 0 : index
    %169 = vector.load %arg7[%c0_148, %c0_149] : memref<128x128xf32, #tpu.memory_space<vmem>>, vector<128x128xf32>
    tpu.vector_store %arg7[%c0_148, %c0_149], %168 {strides = array<i32>} : memref<128x128xf32, #tpu.memory_space<vmem>>, vector<128x128xf32>,
    return
  }
}

</mosaic_0001>

<bundles_post_ra>
// kernel: encoder_block_forward.1
= control target key start
LH: loop header
LB: loop body
LE: loop exit
PB: predicated region body
PF: predicated region fallthrough
CT: control target
= control target key end

     0   :  { %12 = vsyncpa [#allocation4], 0  ;;  %s5646_s0 = inlined_call_operand.hbm [shape: bf16[2,9,9,128], index: 0, kind: input, shape index: {}]   ;;  %s5647_s1 = inlined_call_operand.hbm [shape: bf16[4,128,128], index: 1, kind: input, shape index: {}]   ;;  %s5648_s2 = inlined_call_operand.hbm [shape: f32[1,128], index: 2, kind: input, shape index: {}]   ;;  %s5649_s3 = inlined_call_operand.hbm [shape: f32[1,128], index: 3, kind: input, shape index: {}]   ;;  %s5650_s4 = inlined_call_operand.hbm [shape: bf16[9,128,128], index: 4, kind: input, shape index: {}]   ;;  %s5651_s5 = inlined_call_operand.hbm [shape: f32[1,128], index: 5, kind: input, shape index: {}]   ;;  %s5652_s6 = inlined_call_operand.hbm [shape: f32[1,128], index: 6, kind: input, shape index: {}]   ;;  %s5653_s7 = inlined_call_operand.hbm [shape: f32[128,128], index: 7, kind: output, shape index: {}]  }
   0x1   :  { %13 = vsyncpa [#allocation7], 0 }
   0x2   :  { %14 = vsyncpa [#allocation10], 0 }
   0x3   :  { %15 = vsyncpa [#allocation13], 0 }
   0x4   :  { %16 = vsyncpa [#allocation5], 0  ;;  %s4621_s24 = smov [#allocation6]   ;;  %s4622_s26 = smov [#allocation9]  }
   0x5   :  { %s34_s25 = sshll.u32 %s4621_s24, 4  ;;  %s57_s27 = sshll.u32 %s4622_s26, 4  ;;  %s35_s25 = int_to_ptr.vmem [resolvable:$true] %s34_s25  ;;  %s4674_s27 = int_to_ptr.vmem [resolvable:$true] %s57_s27 }
   0x6   :  { %s4435_s30 = scalar_lea.hbm %s5647_s1, 4096 }
   0x7   :  { %p4436_p0 = scmp.ne.s32.totalorder %s5647_s1, %s4435_s30  ;;  %p4439_p1 = scmp.lt.u32.totalorder %s4435_s30, %s5647_s1 }
   0x9   :  { %p4441_p2 = pnand %p4439_p1, %p4436_p0 }
   0xb   :  { %4444 = shalt.err (!%p4441_p2)
}
   0xc   :  { %s4445_s12 = scalar_lea.vmem %s35_s25, 4096  ;;  %p4450_p4 = scmp.lt.s32.totalorder %s35_s25, %s35_s25 }
   0xd   :  { %p4446_p3 = scmp.ne.s32.totalorder %s35_s25, %s4445_s12  ;;  %p4451_p5 = scmp.lt.s32.totalorder %s4445_s12, %s4445_s12 }
   0xf   :  { %p4452_p6 = por %p4451_p5, %p4450_p4 }
  0x11   :  { %p4453_p7 = pnand %p4452_p6, %p4446_p3 }
  0x13   :  { %4456 = shalt.err (!%p4453_p7)
}
  0x14   :  { %s4623_s13 = smov 64   ;;  %s4624_s14 = smov 4  }
  0x15   :  { %40 = dma.hbm_to_vmem [thread:$0]  %s5647_s1, 4096, %s35_s25, [#allocation7], %s4623_s13, %s4623_s13, %s4624_s14  }
  0x16   :  { %s4457_s19 = scalar_lea.hbm %s5649_s3, 16 }
  0x17   :  { %p4458_p8 = scmp.ne.s32.totalorder %s5649_s3, %s4457_s19  ;;  %p4461_p9 = scmp.lt.u32.totalorder %s4457_s19, %s5649_s3 }
  0x19   :  { %p4463_p10 = pnand %p4461_p9, %p4458_p8 }
  0x1b   :  { %4466 = shalt.err (!%p4463_p10)
}
  0x1c   :  { %s4467_s24 = scalar_lea.vmem %s4674_s27, 16  ;;  %s4471_s1 = scalar_lea.vmem %s4674_s27, 32 }
  0x1d   :  { %p4468_p11 = scmp.ne.s32.totalorder %s4674_s27, %s4467_s24  ;;  %p4472_p12 = scmp.lt.s32.totalorder %s4674_s27, %s4674_s27 }
  0x1e   :  { %p4473_p13 = scmp.lt.s32.totalorder %s4471_s1, %s4467_s24 }
  0x20   :  { %p4474_p0 = por %p4473_p13, %p4472_p12 }
  0x22   :  { %p4475_p1 = pnand %p4474_p0, %p4468_p11 }
  0x24   :  { %4478 = shalt.err (!%p4475_p1)
}
  0x25   :  { %60 = dma.hbm_to_vmem [thread:$0]  %s5649_s3, 16, %s4674_s27, [#allocation10]  }
  0x26   :  { %s4625_s28 = smov [#allocation12]   ;;  %s4626_s30 = smov [#allocation3]  }
  0x27   :  { %s79_s29 = sshll.u32 %s4625_s28, 4  ;;  %s22_s8 = sshll.u32 %s4626_s30, 4  ;;  %s80_s29 = int_to_ptr.vmem [resolvable:$true] %s79_s29  ;;  %s4709_s8 = int_to_ptr.vmem [resolvable:$true] %s22_s8 }
  0x28   :  { %s4479_s11 = scalar_lea.hbm %s5651_s5, 16 }
  0x29   :  { %p4480_p2 = scmp.ne.s32.totalorder %s5651_s5, %s4479_s11  ;;  %p4483_p3 = scmp.lt.u32.totalorder %s4479_s11, %s5651_s5 }
  0x2b   :  { %p4485_p4 = pnand %p4483_p3, %p4480_p2 }
  0x2d   :  { %4488 = shalt.err (!%p4485_p4)
}
  0x2e   :  { %s4489_s3 = scalar_lea.vmem %s80_s29, 16  ;;  %s4493_s27 = scalar_lea.vmem %s80_s29, 32 }
  0x2f   :  { %p4490_p5 = scmp.ne.s32.totalorder %s80_s29, %s4489_s3  ;;  %p4494_p6 = scmp.lt.s32.totalorder %s80_s29, %s80_s29 }
  0x30   :  { %p4495_p7 = scmp.lt.s32.totalorder %s4493_s27, %s4489_s3 }
  0x32   :  { %p4496_p8 = por %p4495_p7, %p4494_p6 }
  0x34   :  { %p4497_p9 = pnand %p4496_p8, %p4490_p5 }
  0x36   :  { %4500 = shalt.err (!%p4497_p9)
}
  0x37   :  { %82 = dma.hbm_to_vmem [thread:$0]  %s5651_s5, 16, %s80_s29, [#allocation13]  }
  0x38   :  { %s4501_s22 = scalar_lea.hbm %s5646_s0, 2304 }
  0x39   :  { %p4502_p10 = scmp.ne.s32.totalorder %s5646_s0, %s4501_s22  ;;  %p4505_p11 = scmp.lt.u32.totalorder %s4501_s22, %s5646_s0 }
  0x3b   :  { %p4507_p12 = pnand %p4505_p11, %p4502_p10 }
  0x3d   :  { %4510 = shalt.err (!%p4507_p12)
}
  0x3e   :  { %s4511_s26 = scalar_lea.vmem %s4709_s8, 2304  ;;  %p4516_p0 = scmp.lt.s32.totalorder %s4709_s8, %s4709_s8 }
  0x3f   :  { %p4512_p13 = scmp.ne.s32.totalorder %s4709_s8, %s4511_s26  ;;  %p4517_p1 = scmp.lt.s32.totalorder %s4511_s26, %s4511_s26 }
  0x41   :  { %p4518_p2 = por %p4517_p1, %p4516_p0 }
  0x43   :  { %p4519_p3 = pnand %p4518_p2, %p4512_p13 }
  0x45   :  { %4522 = shalt.err (!%p4519_p3)
}
  0x46   :  { %28 = dma.hbm_to_vmem [thread:$0]  %s5646_s0, 2304, %s4709_s8, [#allocation4], %s4623_s13, %s4623_s13, %s4624_s14  }
  0x47   :  { %s4627_s29 = smov [#allocation8]   ;;  %s4628_s9 = smov [#allocation11]  }
  0x48   :  { %s47_s30 = sshll.u32 %s4627_s29, 4  ;;  %s66_s10 = sshll.u32 %s4628_s9, 4  ;;  %s48_s30 = int_to_ptr.vmem [resolvable:$true] %s47_s30  ;;  %s4743_s10 = int_to_ptr.vmem [resolvable:$true] %s66_s10 }
  0x49   :  { %s4523_s15 = scalar_lea.hbm %s5648_s2, 16 }
  0x4a   :  { %p4524_p4 = scmp.ne.s32.totalorder %s5648_s2, %s4523_s15  ;;  %p4527_p5 = scmp.lt.u32.totalorder %s4523_s15, %s5648_s2 }
  0x4c   :  { %p4529_p6 = pnand %p4527_p5, %p4524_p4 }
  0x4e   :  { %4532 = shalt.err (!%p4529_p6)
}
  0x4f   :  { %s4533_s0 = scalar_lea.vmem %s48_s30, 16  ;;  %s4537_s8 = scalar_lea.vmem %s48_s30, 32 }
  0x50   :  { %p4534_p7 = scmp.ne.s32.totalorder %s48_s30, %s4533_s0  ;;  %p4538_p8 = scmp.lt.s32.totalorder %s48_s30, %s48_s30 }
  0x51   :  { %p4539_p9 = scmp.lt.s32.totalorder %s4537_s8, %s4533_s0 }
  0x53   :  { %p4540_p10 = por %p4539_p9, %p4538_p8 }
  0x55   :  { %p4541_p11 = pnand %p4540_p10, %p4534_p7 }
  0x57   :  { %4544 = shalt.err (!%p4541_p11)
}
  0x58   :  { %50 = dma.hbm_to_vmem [thread:$0]  %s5648_s2, 16, %s48_s30, [#allocation7]  }
  0x59   :  { %s4545_s22 = scalar_lea.hbm %s5650_s4, 9216 }
  0x5a   :  { %p4546_p12 = scmp.ne.s32.totalorder %s5650_s4, %s4545_s22  ;;  %p4549_p13 = scmp.lt.u32.totalorder %s4545_s22, %s5650_s4 }
  0x5c   :  { %p4551_p0 = pnand %p4549_p13, %p4546_p12 }
  0x5e   :  { %4554 = shalt.err (!%p4551_p0)
}
  0x5f   :  { %s4555_s26 = scalar_lea.vmem %s4743_s10, 9216  ;;  %p4560_p2 = scmp.lt.s32.totalorder %s4743_s10, %s4743_s10 }
  0x60   :  { %p4556_p1 = scmp.ne.s32.totalorder %s4743_s10, %s4555_s26  ;;  %p4561_p3 = scmp.lt.s32.totalorder %s4555_s26, %s4555_s26 }
  0x62   :  { %p4562_p4 = por %p4561_p3, %p4560_p2 }
  0x64   :  { %p4563_p5 = pnand %p4562_p4, %p4556_p1 }
  0x66   :  { %4566 = shalt.err (!%p4563_p5)
}
  0x67   :  { %72 = dma.hbm_to_vmem [thread:$0]  %s5650_s4, 9216, %s4743_s10, [#allocation10], %s4623_s13, %s4623_s13, %s4624_s14  }
  0x68   :  { %s4629_s28 = smov [#allocation14]   ;;  %s4567_s11 = scalar_lea.hbm %s5652_s6, 16 }
  0x69   :  { %s89_s29 = sshll.u32 %s4629_s28, 4  ;;  %p4568_p6 = scmp.ne.s32.totalorder %s5652_s6, %s4567_s11  ;;  %s90_s29 = int_to_ptr.vmem [resolvable:$true] %s89_s29 }
  0x6a   :  { %p4571_p7 = scmp.lt.u32.totalorder %s4567_s11, %s5652_s6 }
  0x6c   :  { %p4573_p8 = pnand %p4571_p7, %p4568_p6 }
  0x6e   :  { %4576 = shalt.err (!%p4573_p8)
}
  0x6f   :  { %s4577_s3 = scalar_lea.vmem %s90_s29, 16  ;;  %s4581_s4 = scalar_lea.vmem %s90_s29, 32 }
  0x70   :  { %p4578_p9 = scmp.ne.s32.totalorder %s90_s29, %s4577_s3  ;;  %p4582_p10 = scmp.lt.s32.totalorder %s90_s29, %s90_s29 }
  0x71   :  { %p4583_p11 = scmp.lt.s32.totalorder %s4581_s4, %s4577_s3 }
  0x73   :  { %p4584_p12 = por %p4583_p11, %p4582_p10 }
  0x75   :  { %p4585_p13 = pnand %p4584_p12, %p4578_p9 }
  0x77   :  { %4588 = shalt.err (!%p4585_p13)
}
  0x78   :  { %92 = dma.hbm_to_vmem [thread:$0]  %s5652_s6, 16, %s90_s29, [#allocation13]  }
  0x79   :  { %4611 = dma.done.wait [#allocation4], 2304  }
  0x7a   :  { %4612 = vsyncadd [#allocation4], 4294964992 }
  0x7b   :  { %4613 = dma.done.wait [#allocation7], 4112  }
  0x7c   :  { %4614 = vsyncadd [#allocation7], 4294963184 }
  0x7d   :  { %4615 = dma.done.wait [#allocation10], 9232  }
  0x7e   :  { %4616 = vsyncadd [#allocation10], 4294958064 }
  0x7f   :  { %4617 = dma.done.wait [#allocation13], 32  }
  0x80   :  { %4618 = vsyncadd [#allocation13], 4294967264  ;;  %v4311_v0 = vld [vmem:[#allocation6 + $0x40] sm:$0xff]   ;;  %v4312_v1 = vld [vmem:[#allocation6 + $0x48] sm:$0xff]   ;;  %vm243_vm0 = vcmask 1046528   ;;  %s4631_s6 = smov [#allocation15]  }
  0x81   :  { %3690 = vmatprep.subr.bf16.mxu0 %v4311_v0  ;;  %v4313_v2 = vld [vmem:[#allocation6 + $0x50] sm:$0xff]   ;;  %v4314_v3 = vld [vmem:[#allocation6 + $0x58] sm:$0xff]   ;;  %v4793_v8 = vld [vmem:[#allocation3 + $0x10] sm:$0xf]  ;;  %s5616_s10 = sshll.u32 %s4631_s6, 4  ;;  %s3344_s10 = int_to_ptr.vmem [resolvable:$true] %s5616_s10 }
  0x82   :  { %3691 = vmatpush3.bf16.msra.mxu0 %v4311_v0  ;;  %v4789_v4 = vld [vmem:[#allocation3] sm:$0xf]  ;;  %v116_v5 = vld [vmem:[#allocation3 + $0x4] sm:$0x1]  ;;  %v4791_v6 = vld [vmem:[#allocation3 + $0x8] sm:$0xf]  ;;  %v155_v14 = vunpack.c.l.bf16 %v4793_v8  ;;  %p4594_p1 = scmp.lt.s32.totalorder %s3344_s10, %s3344_s10 }
  0x83   :  { %3692 = vmatprep.subr.bf16.mxu0 %v4312_v1  ;;  %v118_v7 = vld [vmem:[#allocation3 + $0xc] sm:$0x1]  ;;  %v120_v9 = vld [vmem:[#allocation3 + $0x14] sm:$0x1]  ;;  %v151_v10 = vunpack.c.l.bf16 %v4789_v4  ;;  %v152_v11 = vunpack.c.l.bf16 %v116_v5  ;;  %v153_v12 = vunpack.c.l.bf16 %v4791_v6  ;;  %v4798_v16 = vld [vmem:[#allocation3 + $0x18] sm:$0xf] }
  0x84   :  { %v154_v13 = vunpack.c.l.bf16 %v118_v7  ;;  %v156_v15 = vunpack.c.l.bf16 %v120_v9  ;;  %v122_v17 = vld [vmem:[#allocation3 + $0x1c] sm:$0x1]  ;;  %v157_v21 = vunpack.c.l.bf16 %v4798_v16  ;;  %v4315_v22 = vld [vmem:[#allocation6 + $0x60] sm:$0xff]   ;;  %v250_v24 = vrot.slane %v155_v14, 1  ;;  %v4802_v29 = vld [vmem:[#allocation3 + $0x20] sm:$0xf] }
  0x85   :  { %v244_v18 = vrot.slane %v151_v10, 1  ;;  %v245_v19 = vrot.slane %v152_v11, 1  ;;  %v247_v20 = vrot.slane %v153_v12, 1  ;;  %v158_v26 = vunpack.c.l.bf16 %v122_v17  ;;  %v124_v33 = vld [vmem:[#allocation3 + $0x24] sm:$0x1]  ;;  %v4316_v42 = vld [vmem:[#allocation6 + $0x68] sm:$0xff]  }
  0x86   :  { %3693 = vmatpush3.bf16.msra.mxu0 %v4312_v1  ;;  %v248_v23 = vrot.slane %v154_v13, 1  ;;  %v251_v25 = vrot.slane %v156_v15, 1  ;;  %v253_v28 = vrot.slane %v157_v21, 1  ;;  %v4810_v34 = vld [vmem:[#allocation3 + $0x28] sm:$0xf]  ;;  %v159_v35 = vunpack.c.l.bf16 %v4802_v29  ;;  %v4317_v50 = vld [vmem:[#allocation6 + $0x70] sm:$0xff]  }
  0x87   :  { %3694 = vmatprep.subr.bf16.mxu0 %v4313_v2  ;;  %v246_v27 = vsel %vm243_vm0, %v244_v18, %v245_v19  ;;  %v254_v32 = vrot.slane %v158_v26, 1  ;;  %v126_v38 = vld [vmem:[#allocation3 + $0x2c] sm:$0x1]  ;;  %v160_v39 = vunpack.c.l.bf16 %v124_v33  ;;  %v161_v40 = vunpack.c.l.bf16 %v4810_v34  ;;  %v4817_v41 = vld [vmem:[#allocation3 + $0x30] sm:$0xf]  ;;  %s4589_s27 = scalar_lea.vmem %s3344_s10, 2048 }
  0x88   :  { %v4805_v30 = vsel %vm243_vm0, %v247_v20, %v248_v23  ;;  %v4808_v31 = vsel %vm243_vm0, %v250_v24, %v251_v25  ;;  %v162_v43 = vunpack.c.l.bf16 %v126_v38  ;;  %v256_v44 = vrot.slane %v159_v35, 1  ;;  %v128_v45 = vld [vmem:[#allocation3 + $0x34] sm:$0x1]  ;;  %v4819_v46 = vld [vmem:[#allocation3 + $0x38] sm:$0xf]  ;;  %v4318_v10 = vld [vmem:[#allocation6 + $0x78] sm:$0xff]   ;;  %p4590_p0 = scmp.ne.s32.totalorder %s3344_s10, %s4589_s27  ;;  %p4595_p2 = scmp.lt.s32.totalorder %s4589_s27, %s4589_s27 }
  0x89   :  { %v308_v36 = vpack.c.bf16 %v4805_v30, %v246_v27  ;;  %v821_v37 = vpack.c.bf16 %v4808_v31, %v4805_v30  ;;  %v163_v47 = vunpack.c.l.bf16 %v4817_v41  ;;  %v257_v48 = vrot.slane %v160_v39, 1  ;;  %v130_v49 = vld [vmem:[#allocation3 + $0x3c] sm:$0x1]  ;;  %v4830_v58 = vld [vmem:[#allocation3 + $0x50] sm:$0xf]  ;;  %v4359_v30 = vld [vmem:[#allocation11 + $0x40] sm:$0xff]  }
  0x8a   :  { %3695 = vmatpush3.bf16.msra.mxu0 %v4313_v2  ;;  %v4823_v51 = vsel %vm243_vm0, %v253_v28, %v254_v32  ;;  %v259_v53 = vrot.slane %v161_v40, 1  ;;  %v260_v54 = vrot.slane %v162_v43, 1  ;;  %v164_v56 = vunpack.c.l.bf16 %v128_v45  ;;  %v136_v59 = vld [vmem:[#allocation3 + $0x54] sm:$0x1]  ;;  %v4833_v62 = vld [vmem:[#allocation3 + $0x48] sm:$0xf]  ;;  %p4596_p3 = por %p4595_p2, %p4594_p1 }
  0x8b   :  { %3696 = vmatprep.subr.bf16.mxu0 %v4314_v3  ;;  %3706 = vmatprep.mubr.bf16.mxu0 %v308_v36  ;;  %v4826_v52 = vsel %vm243_vm0, %v256_v44, %v257_v48  ;;  %v262_v57 = vrot.slane %v163_v47, 1  ;;  %v165_v60 = vunpack.c.l.bf16 %v4819_v46  ;;  %v166_v61 = vunpack.c.l.bf16 %v130_v49  ;;  %v4835_v63 = vld [vmem:[#allocation3 + $0x58] sm:$0xf]  ;;  %v138_v0 = vld [vmem:[#allocation3 + $0x5c] sm:$0x1]  ;;  %v4319_v39 = vld [vmem:[#allocation6] sm:$0xff]  }
  0x8c   :  { %v822_v55 = vpack.c.bf16 %v4826_v52, %v4823_v51  ;;  %v4837_v1 = vld [vmem:[#allocation3 + $0x60] sm:$0xf]  ;;  %v171_v2 = vunpack.c.l.bf16 %v4830_v58  ;;  %v134_v5 = vld [vmem:[#allocation3 + $0x4c] sm:$0x1]  ;;  %v172_v7 = vunpack.c.l.bf16 %v136_v59  ;;  %v173_v9 = vunpack.c.l.bf16 %v4835_v63  ;;  %v4842_v15 = vld [vmem:[#allocation3 + $0x68] sm:$0xf]  ;;  %p4597_p4 = pnand %p4596_p3, %p4590_p0 }
  0x8d   :  { %v263_v11 = vrot.slane %v164_v56, 1  ;;  %v174_v12 = vunpack.c.l.bf16 %v138_v0  ;;  %v175_v13 = vunpack.c.l.bf16 %v4837_v1  ;;  %v142_v17 = vld [vmem:[#allocation3 + $0x6c] sm:$0x1]  ;;  %v4845_v18 = vsel %vm243_vm0, %v259_v53, %v260_v54  ;;  %v4847_v21 = vld [vmem:[#allocation3 + $0x70] sm:$0xf]  ;;  %v4320_v53 = vld [vmem:[#allocation6 + $0x8] sm:$0xff]  }
  0x8e   :  { %3697 = vmatpush3.bf16.msra.mxu0 %v4314_v3  ;;  %v140_v3 = vld [vmem:[#allocation3 + $0x64] sm:$0x1]  ;;  %v265_v19 = vrot.slane %v165_v60, 1  ;;  %v266_v20 = vrot.slane %v166_v61, 1  ;;  %v177_v23 = vunpack.c.l.bf16 %v4842_v15  ;;  %v169_v24 = vunpack.c.l.bf16 %v4833_v62  ;;  %v4851_v28 = vld [vmem:[#allocation3 + $0x78] sm:$0xf] }
  0x8f   :  { %3698 = vmatprep.subr.bf16.mxu0 %v4315_v22  ;;  %v176_v14 = vunpack.c.l.bf16 %v140_v3  ;;  %v170_v25 = vunpack.c.l.bf16 %v134_v5  ;;  %v271_v26 = vrot.slane %v171_v2, 1  ;;  %v178_v27 = vunpack.c.l.bf16 %v142_v17  ;;  %v146_v32 = vld [vmem:[#allocation3 + $0x7c] sm:$0x1] }
  0x90   :  { %v272_v33 = vrot.slane %v172_v7, 1  ;;  %v274_v35 = vrot.slane %v173_v9, 1  ;;  %v179_v36 = vunpack.c.l.bf16 %v4847_v21  ;;  %v275_v40 = vrot.slane %v174_v12, 1 }
  0x91   :  { %v278_v43 = vrot.slane %v176_v14, 1  ;;  %v181_v44 = vunpack.c.l.bf16 %v4851_v28  ;;  %v280_v45 = vrot.slane %v177_v23, 1  ;;  %v281_v47 = vrot.slane %v178_v27, 1  ;;  %v148_v27 = vld [vmem:[#allocation3 + $0x84] sm:$0x1] }
  0x92   :  { %3699 = vmatpush3.bf16.msra.mxu0 %v4315_v22  ;;  %v144_v22 = vld [vmem:[#allocation3 + $0x74] sm:$0x1]  ;;  %v182_v48 = vunpack.c.l.bf16 %v146_v32  ;;  %v309_v49 = vpack.c.bf16 %v4823_v51, %v4808_v31  ;;  %v310_v56 = vpack.c.bf16 %v4845_v18, %v4826_v52  ;;  %v4860_v61 = vsel %vm243_vm0, %v262_v57, %v263_v11  ;;  %v4322_v32 = vld [vmem:[#allocation6 + $0x18] sm:$0xff]   ;;  %v4360_v31 = vld [vmem:[#allocation11 + $0x48] sm:$0xff]  }
  0x93   :  { %3700 = vmatprep.subr.bf16.mxu0 %v4316_v42  ;;  %v180_v38 = vunpack.c.l.bf16 %v144_v22  ;;  %v286_v59 = vrot.slane %v181_v44, 1  ;;  %v268_v0 = vrot.slane %v169_v24, 1  ;;  %v269_v2 = vrot.slane %v170_v25, 1  ;;  %v4898_v25 = vld [vmem:[#allocation3 + $0x80] sm:$0xf]  ;;  %v4324_v44 = vld [vmem:[#allocation6 + $0x28] sm:$0xff]  }
  0x94   :  { %v287_v60 = vrot.slane %v182_v48, 1  ;;  %v4863_v3 = vsel %vm243_vm0, %v265_v19, %v266_v20  ;;  %v4866_v5 = vsel %vm243_vm0, %v271_v26, %v272_v33  ;;  %v4869_v7 = vsel %vm243_vm0, %v274_v35, %v275_v40  ;;  %v4321_v19 = vld [vmem:[#allocation6 + $0x10] sm:$0xff]   ;;  %v4905_v40 = vld [vmem:[#allocation3 + $0x88] sm:$0xf]  ;;  %v4363_v51 = vld [vmem:[#allocation11 + $0x58] sm:$0xff]  }
  0x95   :  { %v284_v54 = vrot.slane %v180_v38, 1  ;;  %v3383_v9 = vcombine.low %v4798_v16, %v4802_v29  ;;  %v4877_v57 = vsel %vm243_vm0, %v280_v45, %v281_v47  ;;  %v3387_v12 = vcombine.low %v4837_v1, %v4842_v15  ;;  %v4362_v52 = vld [vmem:[#allocation11 + $0x80] sm:$0xff]  }
  0x96   :  { %3701 = vmatpush3.bf16.msra.mxu0 %v4316_v42  ;;  %v277_v42 = vrot.slane %v175_v13, 1  ;;  %v4885_v13 = vsel %vm243_vm0, %v286_v59, %v287_v60  ;;  %v823_v14 = vpack.c.bf16 %v4860_v61, %v4845_v18  ;;  %v825_v17 = vpack.c.bf16 %v4869_v7, %v4866_v5  ;;  %v4325_v60 = vld [vmem:[#allocation6 + $0x30] sm:$0xff]   ;;  %3882 = vmatprep.subr.bf16.mxu1 %v4362_v52 }
  0x97   :  { %3702 = vmatprep.subr.bf16.mxu0 %v4317_v50  ;;  %v270_v20 = vsel %vm243_vm0, %v268_v0, %v269_v2  ;;  %v311_v24 = vpack.c.bf16 %v4863_v3, %v4860_v61  ;;  %v183_v33 = vunpack.c.l.bf16 %v4898_v25  ;;  %v184_v35 = vunpack.c.l.bf16 %v148_v27  ;;  %3883 = vmatpush3.bf16.msra.mxu1 %v4362_v52  ;;  %v4369_v18 = vld [vmem:[#allocation11 + $0x70] sm:$0xff]  }
  0x98   :  { %v312_v26 = vpack.c.bf16 %v4866_v5, %v270_v20  ;;  %v4630_v61 = vmov 0.0   ;;  %v4985_v5 = vld [vmem:[#allocation11] sm:$0xff]  }
  0x99   :  { %v289_v45 = vrot.slane %v183_v33, 1  ;;  %v290_v47 = vrot.slane %v184_v35, 1  ;;  %v4326_v33 = vld [vmem:[#allocation6 + $0x38] sm:$0xff]   ;;  %v3358_v35 = vcombine.low %v4789_v4, %v4791_v6  ;;  %v3361_v4 = vcombine.low %v4817_v41, %v4819_v46  ;;  %1230 = vst [vmem:[#allocation2 + $0x100] sm:$0xff] %v4630_v61  ;;  %1231 = vst [vmem:[#allocation2 + $0x108] sm:$0x3] %v4630_v61 }
  0x9a   :  { %3703 = vmatpush3.bf16.msra.mxu0 %v4317_v50  ;;  %v283_v50 = vrot.slane %v179_v36, 1  ;;  %v4902_v36 = vld [vmem:[#allocation3 + $0x40] sm:$0xf]  ;;  %1198 = vst [vmem:[#allocation2] sm:$0xff] %v4630_v61  ;;  %1199 = vst [vmem:[#allocation2 + $0x8] sm:$0x3] %v4630_v61 }
  0x9b   :  { %3704 = vmatprep.subr.bf16.mxu0 %v4318_v10  ;;  %v167_v38 = vunpack.c.l.bf16 %v4902_v36  ;;  %1200 = vst [vmem:[#allocation2 + $0x10] sm:$0xff] %v4630_v61  ;;  %1201 = vst [vmem:[#allocation2 + $0x18] sm:$0x3] %v4630_v61 }
  0x9c   :  { %v4880_v11 = vsel %vm243_vm0, %v283_v50, %v284_v54  ;;  %v132_v50 = vld [vmem:[#allocation3 + $0x44] sm:$0x1]  ;;  %v150_v54 = vld [vmem:[#allocation3 + $0x8c] sm:$0x1]  ;;  %1202 = vst [vmem:[#allocation2 + $0x20] sm:$0xff] %v4630_v61  ;;  %1204 = vst [vmem:[#allocation2 + $0x30] sm:$0xff] %v4630_v61 }
  0x9d   :  { %v827_v23 = vpack.c.bf16 %v4885_v13, %v4880_v11  ;;  %v314_v48 = vpack.c.bf16 %v4880_v11, %v4877_v57  ;;  %v186_v59 = vunpack.c.l.bf16 %v150_v54  ;;  %v4341_v54 = vld [vmem:[#allocation6 + $0xb0] sm:$0xff]   ;;  %1203 = vst [vmem:[#allocation2 + $0x28] sm:$0x3] %v4630_v61  ;;  %1205 = vst [vmem:[#allocation2 + $0x38] sm:$0x3] %v4630_v61 }
  0x9e   :  { %3705 = vmatpush3.bf16.msra.mxu0 %v4318_v10  ;;  %v4874_v10 = vsel %vm243_vm0, %v277_v42, %v278_v43  ;;  %v185_v42 = vunpack.c.l.bf16 %v4905_v40  ;;  %1206 = vst [vmem:[#allocation2 + $0x40] sm:$0xff] %v4630_v61  ;;  %1207 = vst [vmem:[#allocation2 + $0x48] sm:$0x3] %v4630_v61 }
  0x9f   :  { %3722 = vmatprep.subr.bf16.mxu0 %v4319_v39  ;;  %v826_v22 = vpack.c.bf16 %v4877_v57, %v4874_v10  ;;  %v313_v43 = vpack.c.bf16 %v4874_v10, %v4869_v7  ;;  %v817_v2 = vrot.slane %v186_v59, 1  ;;  %v3382_v59 = vcombine.low %v4791_v6, %v4793_v8  ;;  %v4349_v6 = vld [vmem:[#allocation6 + $0xd0] sm:$0xff]   ;;  %1208 = vst [vmem:[#allocation2 + $0x50] sm:$0xff] %v4630_v61  ;;  %v4376_v10 = vld [vmem:[#allocation11 + $0xb8] sm:$0xff]   ;;  %v4988_v57 = vld [vmem:[#allocation11 + $0xc0] sm:$0xff]  }
  0xa0   :  { %1209 = vst [vmem:[#allocation2 + $0x58] sm:$0x3] %v4630_v61  ;;  %1210 = vst [vmem:[#allocation2 + $0x60] sm:$0xff] %v4630_v61  ;;  %v4372_v7 = vld [vmem:[#allocation11 + $0xa8] sm:$0xff]  }
  0xa1   :  { %3707 = vmatmul.mubr.bf16.vlgmr.msra.gmra.mrb[0].mxu0 %v309_v49  ;;  %v813_v49 = vrot.slane %v167_v38, 1  ;;  %v4329_v38 = vld [vmem:[#allocation6 + $0x80] sm:$0xff]   ;;  %1211 = vst [vmem:[#allocation2 + $0x68] sm:$0x3] %v4630_v61  ;;  %1212 = vst [vmem:[#allocation2 + $0x70] sm:$0xff] %v4630_v61 }
  0xa2   :  { %3723 = vmatpush3.bf16.msra.mxu0 %v4319_v39  ;;  %3710 = vmatprep.mubr.bf16.mxu0 %v310_v56  ;;  %v4323_v39 = vld [vmem:[#allocation6 + $0x20] sm:$0xff]   ;;  %v168_v56 = vunpack.c.l.bf16 %v132_v50  ;;  %v3364_v50 = vcombine.low %v4842_v15, %v4847_v21  ;;  %v4366_v15 = vld [vmem:[#allocation11 + $0x90] sm:$0xff]   ;;  %1213 = vst [vmem:[#allocation2 + $0x78] sm:$0x3] %v4630_v61  ;;  %1214 = vst [vmem:[#allocation2 + $0x80] sm:$0xff] %v4630_v61 }
  0xa3   :  { %3724 = vmatprep.subr.bf16.mxu0 %v4320_v53  ;;  %1215 = vst [vmem:[#allocation2 + $0x88] sm:$0x3] %v4630_v61  ;;  %1216 = vst [vmem:[#allocation2 + $0x90] sm:$0xff] %v4630_v61 }
  0xa4   :  { %v814_v0 = vrot.slane %v168_v56, 1  ;;  %v4342_v56 = vld [vmem:[#allocation6 + $0xb8] sm:$0xff]   ;;  %1217 = vst [vmem:[#allocation2 + $0x98] sm:$0x3] %v4630_v61  ;;  %1218 = vst [vmem:[#allocation2 + $0xa0] sm:$0xff] %v4630_v61 }
  0xa5   :  { %1219 = vst [vmem:[#allocation2 + $0xa8] sm:$0x3] %v4630_v61  ;;  %1220 = vst [vmem:[#allocation2 + $0xb0] sm:$0xff] %v4630_v61 }
  0xa6   :  { %3725 = vmatpush3.bf16.msra.mxu0 %v4320_v53  ;;  %v816_v53 = vrot.slane %v185_v42, 1  ;;  %v4916_v20 = vsel %vm243_vm0, %v813_v49, %v814_v0  ;;  %v4330_v42 = vld [vmem:[#allocation6 + $0x88] sm:$0xff]   ;;  %v3363_v49 = vcombine.low %v4835_v63, %v4837_v1  ;;  %v3384_v0 = vcombine.low %v4810_v34, %v4817_v41  ;;  %v4357_v41 = vld [vmem:[#allocation6 + $0xf0] sm:$0xff]   ;;  %1221 = vst [vmem:[#allocation2 + $0xb8] sm:$0x3] %v4630_v61 }
  0xa7   :  { %3726 = vmatprep.subr.bf16.mxu0 %v4321_v19  ;;  %v4367_v1 = vld [vmem:[#allocation11 + $0x68] sm:$0xff]   ;;  %1222 = vst [vmem:[#allocation2 + $0xc0] sm:$0xff] %v4630_v61  ;;  %1223 = vst [vmem:[#allocation2 + $0xc8] sm:$0x3] %v4630_v61 }
  0xa8   :  { %1224 = vst [vmem:[#allocation2 + $0xd0] sm:$0xff] %v4630_v61  ;;  %1225 = vst [vmem:[#allocation2 + $0xd8] sm:$0x3] %v4630_v61 }
  0xa9   :  { %3711 = vmatmul.mubr.bf16.gmra.mrb[4].mxu0 %v311_v24  ;;  %v4919_v24 = vsel %vm243_vm0, %v816_v53, %v817_v2  ;;  %v4338_v53 = vld [vmem:[#allocation6 + $0xa8] sm:$0xff]   ;;  %1226 = vst [vmem:[#allocation2 + $0xe0] sm:$0xff] %v4630_v61  ;;  %1227 = vst [vmem:[#allocation2 + $0xe8] sm:$0x3] %v4630_v61 }
  0xaa   :  { %3727 = vmatpush3.bf16.msra.mxu0 %v4321_v19  ;;  %3714 = vmatprep.mubr.bf16.mxu0 %v312_v26  ;;  %v4913_v19 = vsel %vm243_vm0, %v289_v45, %v290_v47  ;;  %v824_v26 = vpack.c.bf16 %v4916_v20, %v4863_v3  ;;  %v4334_v45 = vld [vmem:[#allocation6 + $0x98] sm:$0xff]   ;;  %v3362_v47 = vcombine.low %v4833_v62, %v4830_v58  ;;  %v4346_v2 = vld [vmem:[#allocation6 + $0xc8] sm:$0xff]  }
  0xab   :  { %3728 = vmatprep.subr.bf16.mxu0 %v4322_v32  ;;  %v828_v27 = vpack.c.bf16 %v4919_v24, %v4913_v19  ;;  %v3365_v62 = vcombine.low %v4851_v28, %v4898_v25  ;;  %1228 = vst [vmem:[#allocation2 + $0xf0] sm:$0xff] %v4630_v61  ;;  %1229 = vst [vmem:[#allocation2 + $0xf8] sm:$0x3] %v4630_v61  ;;  %v4370_v3 = vld [vmem:[#allocation11 + $0xa0] sm:$0xff]  }
  0xac   :  { %1232 = vst [vmem:[#allocation2 + $0x110] sm:$0xff] %v4630_v61  ;;  %1233 = vst [vmem:[#allocation2 + $0x118] sm:$0x3] %v4630_v61 }
  0xad   :  { %1234 = vst [vmem:[#allocation2 + $0x120] sm:$0xff] %v4630_v61  ;;  %1235 = vst [vmem:[#allocation2 + $0x128] sm:$0x3] %v4630_v61 }
  0xae   :  { %3729 = vmatpush3.bf16.msra.mxu0 %v4322_v32  ;;  %v315_v32 = vpack.c.bf16 %v4913_v19, %v4885_v13  ;;  %1236 = vst [vmem:[#allocation2 + $0x130] sm:$0xff] %v4630_v61  ;;  %1237 = vst [vmem:[#allocation2 + $0x138] sm:$0x3] %v4630_v61 }
  0xaf   :  { %3730 = vmatprep.subr.bf16.mxu0 %v4323_v39 }
  0xb1   :  { %3715 = vmatmul.mubr.bf16.gmra.mrb[8].mxu0 %v313_v43  ;;  %v3360_v43 = vcombine.low %v4802_v29, %v4810_v34  ;;  %v4353_v34 = vld [vmem:[#allocation6 + $0xe0] sm:$0xff]   ;;  %v4354_v29 = vld [vmem:[#allocation6 + $0xe8] sm:$0xff]  }
  0xb2   :  { %3731 = vmatpush3.bf16.msra.mxu0 %v4323_v39  ;;  %3718 = vmatprep.mubr.bf16.mxu0 %v314_v48  ;;  %v3359_v39 = vcombine.low %v4793_v8, %v4798_v16  ;;  %v4337_v48 = vld [vmem:[#allocation6 + $0xa0] sm:$0xff]   ;;  %v3385_v8 = vcombine.low %v4819_v46, %v4902_v36  ;;  %v3388_v16 = vcombine.low %v4847_v21, %v4851_v28 }
  0xb3   :  { %3732 = vmatprep.subr.bf16.mxu0 %v4324_v44  ;;  %v3389_v46 = vcombine.low %v4898_v25, %v4905_v40  ;;  %v4368_v21 = vld [vmem:[#allocation11 + $0x98] sm:$0xff]  }
  0xb4   :  { %v4371_v28 = vld [vmem:[#allocation11 + $0x78] sm:$0xff]  }
  0xb6   :  { %3733 = vmatpush3.bf16.msra.mxu0 %v4324_v44  ;;  %v4333_v44 = vld [vmem:[#allocation6 + $0x90] sm:$0xff]  }
  0xb7   :  { %3734 = vmatprep.subr.bf16.mxu0 %v4325_v60 }
  0xb9   :  { %3719 = vmatmul.mubr.bf16.gmra.mrb[12].mxu0 %v315_v32  ;;  %v3386_v32 = vcombine.low %v4830_v58, %v4835_v63  ;;  %v4358_v58 = vld [vmem:[#allocation6 + $0xf8] sm:$0xff]   ;;  %v4364_v63 = vld [vmem:[#allocation11 + $0x88] sm:$0xff]  }
  0xba   :  { %3735 = vmatpush3.bf16.msra.mxu0 %v4325_v60  ;;  %3738 = vmatprep.mubr.bf16.mxu0 %v3358_v35  ;;  %v4345_v60 = vld [vmem:[#allocation6 + $0xc0] sm:$0xff]  }
  0xbb   :  { %3736 = vmatprep.subr.bf16.mxu0 %v4326_v33  ;;  %3884 = vmatprep.subr.bf16.mxu1 %v4364_v63 }
  0xbc   :  { %3885 = vmatpush3.bf16.msra.mxu1 %v4364_v63 }
  0xbd   :  { %3886 = vmatprep.subr.bf16.mxu1 %v4366_v15 }
  0xbe   :  { %3737 = vmatpush3.bf16.msra.mxu0 %v4326_v33  ;;  %v4350_v33 = vld [vmem:[#allocation6 + $0xd8] sm:$0xff]  }
  0xbf   :  { %3754 = vmatprep.subr.bf16.mxu0 %v4329_v38 }
  0xc0   :  { %3887 = vmatpush3.bf16.msra.mxu1 %v4366_v15 }
  0xc1   :  { %3739 = vmatmul.mubr.bf16.vlgmr.msra.gmra.mrb[0].mxu0 %v3359_v39  ;;  %3888 = vmatprep.subr.bf16.mxu1 %v4368_v21 }
  0xc2   :  { %3755 = vmatpush3.bf16.msra.mxu0 %v4329_v38  ;;  %3742 = vmatprep.mubr.bf16.mxu0 %v3360_v43 }
  0xc3   :  { %3756 = vmatprep.subr.bf16.mxu0 %v4330_v42 }
  0xc4   :  { %3889 = vmatpush3.bf16.msra.mxu1 %v4368_v21 }
  0xc5   :  { %3890 = vmatprep.subr.bf16.mxu1 %v4370_v3 }
  0xc6   :  { %3757 = vmatpush3.bf16.msra.mxu0 %v4330_v42 }
  0xc7   :  { %3758 = vmatprep.subr.bf16.mxu0 %v4333_v44 }
  0xc8   :  { %3891 = vmatpush3.bf16.msra.mxu1 %v4370_v3 }
  0xc9   :  { %3743 = vmatmul.mubr.bf16.gmra.mrb[4].mxu0 %v3361_v4  ;;  %3892 = vmatprep.subr.bf16.mxu1 %v4372_v7 }
  0xca   :  { %3759 = vmatpush3.bf16.msra.mxu0 %v4333_v44  ;;  %3746 = vmatprep.mubr.bf16.mxu0 %v3362_v47 }
  0xcb   :  { %3760 = vmatprep.subr.bf16.mxu0 %v4334_v45 }
  0xcc   :  { %3893 = vmatpush3.bf16.msra.mxu1 %v4372_v7 }
  0xce   :  { %3761 = vmatpush3.bf16.msra.mxu0 %v4334_v45 }
  0xcf   :  { %3762 = vmatprep.subr.bf16.mxu0 %v4337_v48 }
  0xd1   :  { %3747 = vmatmul.mubr.bf16.gmra.mrb[8].mxu0 %v3363_v49 }
  0xd2   :  { %3763 = vmatpush3.bf16.msra.mxu0 %v4337_v48  ;;  %3750 = vmatprep.mubr.bf16.mxu0 %v3364_v50 }
  0xd3   :  { %3764 = vmatprep.subr.bf16.mxu0 %v4338_v53 }
  0xd6   :  { %3765 = vmatpush3.bf16.msra.mxu0 %v4338_v53 }
  0xd7   :  { %3766 = vmatprep.subr.bf16.mxu0 %v4341_v54 }
  0xd9   :  { %3751 = vmatmul.mubr.bf16.gmra.mrb[12].mxu0 %v3365_v62 }
  0xda   :  { %3767 = vmatpush3.bf16.msra.mxu0 %v4341_v54  ;;  %3770 = vmatprep.mubr.bf16.mxu0 %v3382_v59 }
  0xdb   :  { %3768 = vmatprep.subr.bf16.mxu0 %v4342_v56 }
  0xde   :  { %3769 = vmatpush3.bf16.msra.mxu0 %v4342_v56 }
  0xdf   :  { %3786 = vmatprep.subr.bf16.mxu0 %v4345_v60 }
  0xe1   :  { %3771 = vmatmul.mubr.bf16.vlgmr.msra.gmra.mrb[0].mxu0 %v3383_v9  ;;  %v4374_v9 = vld [vmem:[#allocation11 + $0xb0] sm:$0xff]  }
  0xe2   :  { %3787 = vmatpush3.bf16.msra.mxu0 %v4345_v60  ;;  %3774 = vmatprep.mubr.bf16.mxu0 %v3384_v0 }
  0xe3   :  { %3788 = vmatprep.subr.bf16.mxu0 %v4346_v2  ;;  %3894 = vmatprep.subr.bf16.mxu1 %v4374_v9 }
  0xe4   :  { %3895 = vmatpush3.bf16.msra.mxu1 %v4374_v9 }
  0xe5   :  { %3896 = vmatprep.subr.bf16.mxu1 %v4376_v10 }
  0xe6   :  { %3789 = vmatpush3.bf16.msra.mxu0 %v4346_v2 }
  0xe7   :  { %3790 = vmatprep.subr.bf16.mxu0 %v4349_v6 }
  0xe8   :  { %3897 = vmatpush3.bf16.msra.mxu1 %v4376_v10 }
  0xe9   :  { %3775 = vmatmul.mubr.bf16.gmra.mrb[4].mxu0 %v3385_v8  ;;  %3914 = vmatprep.subr.bf16.mxu1 %v4988_v57 }
  0xea   :  { %3791 = vmatpush3.bf16.msra.mxu0 %v4349_v6  ;;  %3778 = vmatprep.mubr.bf16.mxu0 %v3386_v32 }
  0xeb   :  { %3792 = vmatprep.subr.bf16.mxu0 %v4350_v33 }
  0xee   :  { %3793 = vmatpush3.bf16.msra.mxu0 %v4350_v33 }
  0xef   :  { %3794 = vmatprep.subr.bf16.mxu0 %v4353_v34 }
  0xf1   :  { %3779 = vmatmul.mubr.bf16.gmra.mrb[8].mxu0 %v3387_v12 }
  0xf2   :  { %3795 = vmatpush3.bf16.msra.mxu0 %v4353_v34  ;;  %3782 = vmatprep.mubr.bf16.mxu0 %v3388_v16 }
  0xf3   :  { %3796 = vmatprep.subr.bf16.mxu0 %v4354_v29 }
  0xf6   :  { %3797 = vmatpush3.bf16.msra.mxu0 %v4354_v29 }
  0xf7   :  { %3798 = vmatprep.subr.bf16.mxu0 %v4357_v41 }
  0xf9   :  { %3783 = vmatmul.mubr.bf16.gmra.mrb[12].mxu0 %v3389_v46 }
  0xfa   :  { %3799 = vmatpush3.bf16.msra.mxu0 %v4357_v41  ;;  %3802 = vmatprep.mubr.bf16.mxu0 %v821_v37  ;;  %v4361_v37 = vld [vmem:[#allocation11 + $0x50] sm:$0xff]  }
  0xfb   :  { %3800 = vmatprep.subr.bf16.mxu0 %v4358_v58 }
  0xfe   :  { %3801 = vmatpush3.bf16.msra.mxu0 %v4358_v58 }
  0xff   :  { %3818 = vmatprep.subr.bf16.mxu0 %v4359_v30 }
 0x101   :  { %3803 = vmatmul.mubr.bf16.vlgmr.msra.gmra.mrb[0].mxu0 %v822_v55  ;;  %v4365_v55 = vld [vmem:[#allocation11 + $0x60] sm:$0xff]  }
 0x102   :  { %3806 = vmatprep.mubr.bf16.mxu0 %v823_v14  ;;  %3819 = vmatpush3.bf16.msra.mxu0 %v4359_v30 }
 0x103   :  { %3820 = vmatprep.subr.bf16.mxu0 %v4360_v31 }
 0x106   :  { %3821 = vmatpush3.bf16.msra.mxu0 %v4360_v31 }
 0x107   :  { %3822 = vmatprep.subr.bf16.mxu0 %v4361_v37 }
 0x109   :  { %3807 = vmatmul.mubr.bf16.gmra.mrb[4].mxu0 %v824_v26 }
 0x10a   :  { %3810 = vmatprep.mubr.bf16.mxu0 %v825_v17  ;;  %3823 = vmatpush3.bf16.msra.mxu0 %v4361_v37 }
 0x10b   :  { %3824 = vmatprep.subr.bf16.mxu0 %v4363_v51 }
 0x10e   :  { %3825 = vmatpush3.bf16.msra.mxu0 %v4363_v51 }
 0x10f   :  { %3826 = vmatprep.subr.bf16.mxu0 %v4365_v55 }
 0x111   :  { %3811 = vmatmul.mubr.bf16.gmra.mrb[8].mxu0 %v826_v22 }
 0x112   :  { %3814 = vmatprep.mubr.bf16.mxu0 %v827_v23  ;;  %3827 = vmatpush3.bf16.msra.mxu0 %v4365_v55 }
 0x113   :  { %3828 = vmatprep.subr.bf16.mxu0 %v4367_v1 }
 0x116   :  { %3829 = vmatpush3.bf16.msra.mxu0 %v4367_v1 }
 0x117   :  { %3830 = vmatprep.subr.bf16.mxu0 %v4369_v18 }
 0x119   :  { %3815 = vmatmul.mubr.bf16.gmra.mrb[12].mxu0 %v828_v27 }
 0x11a   :  { %3831 = vmatpush3.bf16.msra.mxu0 %v4369_v18 }
 0x11b   :  { %3832 = vmatprep.subr.bf16.mxu0 %v4371_v28 }
 0x11e   :  { %3833 = vmatpush3.bf16.msra.mxu0 %v4371_v28 }
 0x11f   :  { %3850 = vmatprep.subr.bf16.mxu0 %v4985_v5 }
 0x1d4   :  { %v4991_v11 = vpop.f32.mrb[0].mxu0 }
 0x1d5   :  { %v4993_v12 = vpop.f32.mrb[1].mxu0  ;;  %v1032_v25 = vmul.f32 %v4991_v11, %v4991_v11 }
 0x1d6   :  { %v4995_v13 = vpop.f32.mrb[2].mxu0  ;;  %v1030_v17 = vmul.f32 %v4993_v12, %v4993_v12 }
 0x1d7   :  { %v4997_v14 = vpop.f32.mrb[3].mxu0  ;;  %v1033_v19 = vmul.f32 %v4995_v13, %v4995_v13 }
 0x1d8   :  { %v1009_v22 = vadd.f32 %v4997_v14, %v4993_v12  ;;  %v1031_v23 = vmul.f32 %v4997_v14, %v4997_v14 }
 0x1da   :  { %v1010_v36 = vadd.f32 %v4991_v11, %v1009_v22  ;;  %v1046_v40 = vadd.f32 %v1031_v23, %v1030_v17 }
 0x1dc   :  { %v1047_v20 = vadd.f32 %v1046_v40, %v1032_v25  ;;  %v5010_v24 = vpop.f32.mrb[4].mxu0  ;;  %v1011_v26 = vadd.f32 %v4995_v13, %v1010_v36 }
 0x1dd   :  { %v5013_v27 = vpop.f32.mrb[5].mxu0  ;;  %v1036_v47 = vmul.f32 %v5010_v24, %v5010_v24 }
 0x1de   :  { %v1012_v35 = vadd.f32 %v1011_v26, %v5013_v27  ;;  %v1034_v38 = vmul.f32 %v5013_v27, %v5013_v27  ;;  %v1048_v39 = vadd.f32 %v1047_v20, %v1033_v19  ;;  %v5018_v42 = vpop.f32.mrb[6].mxu0 }
 0x1df   :  { %v5020_v43 = vpop.f32.mrb[7].mxu0  ;;  %v1037_v53 = vmul.f32 %v5018_v42, %v5018_v42 }
 0x1e0   :  { %v1049_v44 = vadd.f32 %v1048_v39, %v1034_v38  ;;  %v1013_v4 = vadd.f32 %v1012_v35, %v5020_v43  ;;  %v1035_v45 = vmul.f32 %v5020_v43, %v5020_v43 }
 0x1e2   :  { %v1014_v48 = vadd.f32 %v5010_v24, %v1013_v4  ;;  %v1050_v49 = vadd.f32 %v1049_v44, %v1035_v45 }
 0x1e4   :  { %v1051_v50 = vadd.f32 %v1050_v49, %v1036_v47  ;;  %v5030_v54 = vpop.f32.mrb[8].mxu0  ;;  %v1015_v62 = vadd.f32 %v5018_v42, %v1014_v48 }
 0x1e5   :  { %v5033_v56 = vpop.f32.mrb[9].mxu0  ;;  %v1040_v34 = vmul.f32 %v5030_v54, %v5030_v54 }
 0x1e6   :  { %v1016_v59 = vadd.f32 %v1015_v62, %v5033_v56  ;;  %v1038_v60 = vmul.f32 %v5033_v56, %v5033_v56  ;;  %v1052_v0 = vadd.f32 %v1051_v50, %v1037_v53  ;;  %v5038_v2 = vpop.f32.mrb[10].mxu0 }
 0x1e7   :  { %v5040_v6 = vpop.f32.mrb[11].mxu0  ;;  %v1041_v41 = vmul.f32 %v5038_v2, %v5038_v2 }
 0x1e8   :  { %v1053_v8 = vadd.f32 %v1052_v0, %v1038_v60  ;;  %v1017_v32 = vadd.f32 %v1016_v59, %v5040_v6  ;;  %v1039_v33 = vmul.f32 %v5040_v6, %v5040_v6 }
 0x1ea   :  { %v1018_v16 = vadd.f32 %v5030_v54, %v1017_v32  ;;  %v1054_v29 = vadd.f32 %v1053_v8, %v1039_v33 }
 0x1ec   :  { %v1055_v46 = vadd.f32 %v1054_v29, %v1040_v34  ;;  %v5050_v58 = vpop.f32.mrb[12].mxu0  ;;  %v1019_v30 = vadd.f32 %v5038_v2, %v1018_v16  ;;  %v5103_v16 = vld [vmem:[#allocation8] ss:$0 sm:$0xff] }
 0x1ed   :  { %v5053_v31 = vpop.f32.mrb[13].mxu0  ;;  %v1044_v21 = vmul.f32 %v5050_v58, %v5050_v58 }
 0x1ee   :  { %v1020_v37 = vadd.f32 %v1019_v30, %v5053_v31  ;;  %v1042_v51 = vmul.f32 %v5053_v31, %v5053_v31  ;;  %v1056_v52 = vadd.f32 %v1055_v46, %v1041_v41  ;;  %v5058_v55 = vpop.f32.mrb[14].mxu0 }
 0x1ef   :  { %v979_v63 = vpop.f32.mrb[15].mxu0  ;;  %v1045_v3 = vmul.f32 %v5058_v55, %v5058_v55 }
 0x1f0   :  { %v1057_v1 = vadd.f32 %v1056_v52, %v1042_v51  ;;  %v1021_v15 = vadd.f32 %v1020_v37, %v979_v63  ;;  %v1043_v18 = vmul.f32 %v979_v63, %v979_v63  ;;  %v5109_v37 = vld [vmem:[#allocation9] ss:$0 sm:$0xff] }
 0x1f2   :  { %v1022_v28 = vadd.f32 %v5050_v58, %v1021_v15  ;;  %v1058_v61 = vadd.f32 %v1057_v1, %v1043_v18 }
 0x1f4   :  { %v1023_v7 = vadd.f32 %v5058_v55, %v1022_v28  ;;  %v1059_v9 = vadd.f32 %v1058_v61, %v1044_v21 }
 0x1f6   :  { %v1024_v10 = vrot.slane %v1023_v7, 4  ;;  %v1060_v17 = vadd.f32 %v1059_v9, %v1045_v3 }
 0x1f8   :  { %v1025_v22 = vadd.f32 %v1024_v10, %v1023_v7  ;;  %v1061_v23 = vrot.slane %v1060_v17, 4 }
 0x1fa   :  { %v1026_v25 = vrot.slane %v1025_v22, 2  ;;  %v1062_v36 = vadd.f32 %v1061_v23, %v1060_v17 }
 0x1fc   :  { %v1027_v40 = vadd.f32 %v1026_v25, %v1025_v22  ;;  %v1063_v19 = vrot.slane %v1062_v36, 2 }
 0x1fe   :  { %v1028_v20 = vrot.slane %v1027_v40, 1  ;;  %v1064_v26 = vadd.f32 %v1063_v19, %v1062_v36 }
 0x200   :  { %v1029_v35 = vadd.f32 %v1028_v20, %v1027_v40  ;;  %v1065_v38 = vrot.slane %v1064_v26, 1 }
 0x202   :  { %v1066_v39 = vadd.f32 %v1065_v38, %v1064_v26  ;;  %v5066_v44 = vmul.f32 0.0078125, %v1029_v35 }
 0x204   :  { %v1068_v4 = vmul.f32 0.0078125, %v1066_v39  ;;  %v1069_v45 = vmul.f32 %v5066_v44, %v5066_v44  ;;  %v1085_v47 = vsub.f32 %v979_v63, %v5066_v44  ;;  %v1072_v48 = vsub.f32 %v4993_v12, %v5066_v44 }
 0x205   :  { %v1073_v49 = vsub.f32 %v4997_v14, %v5066_v44  ;;  %v1074_v53 = vsub.f32 %v4991_v11, %v5066_v44  ;;  %v1075_v50 = vsub.f32 %v4995_v13, %v5066_v44  ;;  %v1076_v62 = vsub.f32 %v5013_v27, %v5066_v44 }
 0x206   :  { %v1070_v59 = vsub.f32 %v1068_v4, %v1069_v45  ;;  %v1077_v60 = vsub.f32 %v5020_v43, %v5066_v44  ;;  %v1078_v0 = vsub.f32 %v5010_v24, %v5066_v44  ;;  %v1080_v12 = vsub.f32 %v5033_v56, %v5066_v44 }
 0x207   :  { %v1081_v14 = vsub.f32 %v5040_v6, %v5066_v44  ;;  %v1082_v11 = vsub.f32 %v5030_v54, %v5066_v44  ;;  %v1083_v13 = vsub.f32 %v5038_v2, %v5066_v44  ;;  %v1084_v27 = vsub.f32 %v5053_v31, %v5066_v44  ;;  %v4377_v31 = vld [vmem:[#allocation11 + $0x10] sm:$0xff]  }
 0x208   :  { %v1071_v8 = vmax.f32 %v1070_v59, 0.0  ;;  %v1086_v43 = vsub.f32 %v5050_v58, %v5066_v44  ;;  %v1079_v24 = vsub.f32 %v5018_v42, %v5066_v44  ;;  %v1087_v32 = vsub.f32 %v5058_v55, %v5066_v44 }
 0x20a   :  { %v1088_v33 = vadd.f32 1e-05, %v1071_v8 }
 0x20c   :  { %4431 = vrsqrt.f32 %v1088_v33 }
 0x216   :  { %v5101_v34 = vpop.eup %4431 }
 0x217   :  { %v1103_v29 = vmul.f32 %v5101_v34, %v1085_v47  ;;  %v1090_v41 = vmul.f32 %v5101_v34, %v1072_v48  ;;  %v1091_v46 = vmul.f32 %v5101_v34, %v1073_v49  ;;  %v1092_v30 = vmul.f32 %v5101_v34, %v1074_v53 }
 0x218   :  { %v1093_v51 = vmul.f32 %v5101_v34, %v1075_v50  ;;  %v1094_v52 = vmul.f32 %v5101_v34, %v1076_v62  ;;  %v1095_v63 = vmul.f32 %v5101_v34, %v1077_v60  ;;  %v1096_v1 = vmul.f32 %v5101_v34, %v1078_v0  ;;  %v4375_v60 = vld [vmem:[#allocation11 + $0x8] sm:$0xff]  }
 0x219   :  { %v1125_v15 = vmul.f32 %v5103_v16, %v1103_v29  ;;  %v1112_v18 = vmul.f32 %v5103_v16, %v1090_v41  ;;  %v1113_v21 = vmul.f32 %v5103_v16, %v1091_v46  ;;  %v1114_v28 = vmul.f32 %v5103_v16, %v1092_v30 }
 0x21a   :  { %v1115_v61 = vmul.f32 %v5103_v16, %v1093_v51  ;;  %v1116_v3 = vmul.f32 %v5103_v16, %v1094_v52  ;;  %v1117_v7 = vmul.f32 %v5103_v16, %v1095_v63  ;;  %v1118_v9 = vmul.f32 %v5103_v16, %v1096_v1 }
 0x21b   :  { %v1147_v10 = vadd.f32 %v5109_v37, %v1125_v15  ;;  %v1134_v17 = vadd.f32 %v5109_v37, %v1112_v18  ;;  %v1135_v22 = vadd.f32 %v5109_v37, %v1113_v21  ;;  %v1136_v23 = vadd.f32 %v5109_v37, %v1114_v28  ;;  %v5208_v28 = vld [vmem:[#allocation11 + $0x18] sm:$0xff]  }
 0x21c   :  { %v1137_v25 = vadd.f32 %v5109_v37, %v1115_v61  ;;  %v1138_v36 = vadd.f32 %v5109_v37, %v1116_v3  ;;  %v1139_v40 = vadd.f32 %v5109_v37, %v1117_v7  ;;  %v1140_v19 = vadd.f32 %v5109_v37, %v1118_v9 }
 0x21d   :  { %vm1163_vm1 = vcmp.ge.f32.partialorder %v1147_v10, 0.0  ;;  %v1179_v20 = vmul.f32 0.2, %v1147_v10  ;;  %vm1150_vm2 = vcmp.ge.f32.partialorder %v1134_v17, 0.0  ;;  %vm1151_vm3 = vcmp.ge.f32.partialorder %v1135_v22, 0.0 }
 0x21e   :  { %v1166_v26 = vmul.f32 0.2, %v1134_v17  ;;  %v1167_v35 = vmul.f32 0.2, %v1135_v22  ;;  %vm1152_vm4 = vcmp.ge.f32.partialorder %v1136_v23, 0.0  ;;  %vm1153_vm5 = vcmp.ge.f32.partialorder %v1137_v25, 0.0 }
 0x21f   :  { %v5131_v38 = vsel %vm1163_vm1, %v1147_v10, %v1179_v20  ;;  %v1168_v39 = vmul.f32 0.2, %v1136_v23  ;;  %vm1154_vm6 = vcmp.ge.f32.partialorder %v1138_v36, 0.0  ;;  %v1169_v4 = vmul.f32 0.2, %v1137_v25 }
 0x220   :  { %1252 = vst [vmem:[#allocation2 + $0x101] sm:$0xff] %v5131_v38  ;;  %v5134_v45 = vsel %vm1150_vm2, %v1134_v17, %v1166_v26  ;;  %v5136_v47 = vsel %vm1151_vm3, %v1135_v22, %v1167_v35  ;;  %v1170_v48 = vmul.f32 0.2, %v1138_v36  ;;  %vm1155_vm7 = vcmp.ge.f32.partialorder %v1139_v40, 0.0 }
 0x221   :  { %1239 = vst [vmem:[#allocation2 + $0x11] sm:$0xff] %v5134_v45  ;;  %1240 = vst [vmem:[#allocation2 + $0x21] sm:$0xff] %v5136_v47  ;;  %v1402_v49 = vpack.c.bf16 %v5134_v45, %v5136_v47  ;;  %v5143_v53 = vsel %vm1152_vm4, %v1136_v23, %v1168_v39  ;;  %v5145_v50 = vsel %vm1153_vm5, %v1137_v25, %v1169_v4  ;;  %vm1156_vm8 = vcmp.ge.f32.partialorder %v1140_v19, 0.0 }
 0x222   :  { %1258 = vst [vmem:[#allocation2 + $0x1] sm:$0xff] %v5136_v47  ;;  %1241 = vst [vmem:[#allocation2 + $0x31] sm:$0xff] %v5143_v53  ;;  %v1403_v62 = vpack.c.bf16 %v5143_v53, %v5136_v47  ;;  %v5151_v59 = vsel %vm1154_vm6, %v1138_v36, %v1170_v48  ;;  %v1171_v0 = vmul.f32 0.2, %v1139_v40  ;;  %v1172_v8 = vmul.f32 0.2, %v1140_v19 }
 0x223   :  { %1242 = vst [vmem:[#allocation2 + $0x41] sm:$0xff] %v5145_v50  ;;  %3834 = vmatprep.mubr.bf16.mxu0 %v1402_v49  ;;  %1243 = vst [vmem:[#allocation2 + $0x51] sm:$0xff] %v5151_v59  ;;  %v1404_v33 = vpack.c.bf16 %v5151_v59, %v5145_v50  ;;  %v1098_v29 = vmul.f32 %v5101_v34, %v1080_v12  ;;  %v1099_v41 = vmul.f32 %v5101_v34, %v1081_v14 }
 0x224   :  { %v1100_v46 = vmul.f32 %v5101_v34, %v1082_v11  ;;  %3835 = vmatmul.mubr.bf16.vlgmr.msra.gmra.mrb[16].mxu0 %v1403_v62  ;;  %v5170_v30 = vsel %vm1155_vm7, %v1139_v40, %v1171_v0  ;;  %v5173_v51 = vsel %vm1156_vm8, %v1140_v19, %v1172_v8  ;;  %v1101_v56 = vmul.f32 %v5101_v34, %v1083_v13  ;;  %v5225_v19 = vld [vmem:[#allocation11 + $0x20] sm:$0xff]  }
 0x225   :  { %v1102_v6 = vmul.f32 %v5101_v34, %v1084_v27  ;;  %3838 = vmatprep.mubr.bf16.mxu0 %v1404_v33  ;;  %3851 = vmatpush3.bf16.msra.mxu0 %v4985_v5  ;;  %1244 = vst [vmem:[#allocation2 + $0x61] sm:$0xff] %v5170_v30  ;;  %1245 = vst [vmem:[#allocation2 + $0x71] sm:$0xff] %v5173_v51  ;;  %v1405_v54 = vpack.c.bf16 %v5173_v51, %v5170_v30 }
 0x226   :  { %v1120_v12 = vmul.f32 %v5103_v16, %v1098_v29  ;;  %v1121_v2 = vmul.f32 %v5103_v16, %v1099_v41  ;;  %1264 = vst [vmem:[#allocation2 + $0x91] sm:$0xff] %v5173_v51  ;;  %3852 = vmatprep.subr.bf16.mxu0 %v4375_v60  ;;  %v1122_v14 = vmul.f32 %v5103_v16, %v1100_v46 }
 0x227   :  { %v1123_v11 = vmul.f32 %v5103_v16, %v1101_v56  ;;  %v1124_v5 = vmul.f32 %v5103_v16, %v1102_v6  ;;  %v1104_v13 = vmul.f32 %v5101_v34, %v1086_v43  ;;  %v1282_v27 = vld [vmem:[#allocation2 + $0x102] sm:$0x1]  ;;  %v1322_v52 = vld [vmem:[#allocation2 + $0x107] sm:$0x1]  ;;  %v1097_v15 = vmul.f32 %v5101_v34, %v1079_v24 }
 0x228   :  { %v1142_v63 = vadd.f32 %v5109_v37, %v1120_v12  ;;  %v1143_v1 = vadd.f32 %v5109_v37, %v1121_v2  ;;  %v1105_v18 = vmul.f32 %v5101_v34, %v1087_v32  ;;  %1302 = vst [vmem:[#allocation2 + $0x100] sm:$0x1] %v1282_v27  ;;  %1342 = vst [vmem:[#allocation2 + $0x109] sm:$0x1] %v1322_v52  ;;  %v1307_v43 = vld [vmem:[#allocation2 + $0x17] sm:$0x1] }
 0x229   :  { %v1306_v58 = vld [vmem:[#allocation2 + $0x7] sm:$0x1]  ;;  %v1144_v61 = vadd.f32 %v5109_v37, %v1122_v14  ;;  %v1145_v3 = vadd.f32 %v5109_v37, %v1123_v11  ;;  %v1146_v42 = vadd.f32 %v5109_v37, %v1124_v5  ;;  %v1126_v24 = vmul.f32 %v5103_v16, %v1104_v13  ;;  %3853 = vmatpush3.bf16.msra.mxu0 %v4375_v60  ;;  %v1309_v55 = vld [vmem:[#allocation2 + $0x37] sm:$0x1]  ;;  %v1266_v36 = vld [vmem:[#allocation2 + $0x2] sm:$0x1] }
 0x22a   :  { %v1308_v21 = vld [vmem:[#allocation2 + $0x27] sm:$0x1]  ;;  %1326 = vst [vmem:[#allocation2 + $0x9] sm:$0x1] %v1306_v58  ;;  %1327 = vst [vmem:[#allocation2 + $0x19] sm:$0x1] %v1307_v43  ;;  %v1119_v32 = vmul.f32 %v5103_v16, %v1097_v15  ;;  %3854 = vmatprep.subr.bf16.mxu0 %v4377_v31  ;;  %v1127_v17 = vmul.f32 %v5103_v16, %v1105_v18  ;;  %v2137_v22 = vpack.c.bf16 %v5136_v47, %v5134_v45 }
 0x22b   :  { %1328 = vst [vmem:[#allocation2 + $0x29] sm:$0x1] %v1308_v21  ;;  %vm1158_vm9 = vcmp.ge.f32.partialorder %v1142_v63, 0.0  ;;  %vm1159_vm10 = vcmp.ge.f32.partialorder %v1143_v1, 0.0  ;;  %v1174_v44 = vmul.f32 0.2, %v1142_v63  ;;  %v1148_v10 = vadd.f32 %v5109_v37, %v1126_v24 }
 0x22c   :  { %1329 = vst [vmem:[#allocation2 + $0x39] sm:$0x1] %v1309_v55  ;;  %v1175_v34 = vmul.f32 0.2, %v1143_v1  ;;  %v1310_v7 = vld [vmem:[#allocation2 + $0x47] sm:$0x1]  ;;  %3839 = vmatmul.mubr.bf16.gmra.mrb[20].mxu0 %v1405_v54  ;;  %v1141_v26 = vadd.f32 %v5109_v37, %v1119_v32  ;;  %v1149_v33 = vadd.f32 %v5109_v37, %v1127_v17  ;;  %v2138_v29 = vpack.c.bf16 %v5145_v50, %v5143_v53 }
 0x22d   :  { %v1311_v9 = vld [vmem:[#allocation2 + $0x57] sm:$0x1]  ;;  %v5219_v23 = vsel %vm1158_vm9, %v1142_v63, %v1174_v44  ;;  %1330 = vst [vmem:[#allocation2 + $0x49] sm:$0x1] %v1310_v7  ;;  %vm1160_vm11 = vcmp.ge.f32.partialorder %v1144_v61, 0.0  ;;  %vm1161_vm12 = vcmp.ge.f32.partialorder %v1145_v3, 0.0  ;;  %3855 = vmatpush3.bf16.msra.mxu0 %v4377_v31  ;;  %v2139_v54 = vpack.c.bf16 %v5170_v30, %v5151_v59 }
 0x22e   :  { %1331 = vst [vmem:[#allocation2 + $0x59] sm:$0x1] %v1311_v9  ;;  %v1176_v25 = vmul.f32 0.2, %v1144_v61  ;;  %v5222_v40 = vsel %vm1159_vm10, %v1143_v1, %v1175_v34  ;;  %1247 = vst [vmem:[#allocation2 + $0xb1] sm:$0xff] %v5219_v23  ;;  %vm1162_vm13 = vcmp.ge.f32.partialorder %v1146_v42, 0.0  ;;  %3856 = vmatprep.subr.bf16.mxu0 %v5208_v28 }
 0x22f   :  { %v1312_v16 = vld [vmem:[#allocation2 + $0x67] sm:$0x1]  ;;  %v1313_v20 = vld [vmem:[#allocation2 + $0x77] sm:$0x1]  ;;  %vm1164_vm14 = vcmp.ge.f32.partialorder %v1148_v10, 0.0  ;;  %1248 = vst [vmem:[#allocation2 + $0xc1] sm:$0xff] %v5222_v40  ;;  %v1406_v35 = vpack.c.bf16 %v5219_v23, %v5222_v40 }
 0x230   :  { %1286 = vst [vmem:[#allocation2] sm:$0x1] %v1266_v36  ;;  %1259 = vst [vmem:[#allocation2 + $0xa1] sm:$0xff] %v5222_v40  ;;  %v5233_v39 = vsel %vm1160_vm11, %v1144_v61, %v1176_v25  ;;  %v1177_v4 = vmul.f32 0.2, %v1145_v3  ;;  %vm1157_vm15 = vcmp.ge.f32.partialorder %v1141_v26, 0.0 }
 0x231   :  { %1332 = vst [vmem:[#allocation2 + $0x69] sm:$0x1] %v1312_v16  ;;  %1333 = vst [vmem:[#allocation2 + $0x79] sm:$0x1] %v1313_v20  ;;  %v1178_v48 = vmul.f32 0.2, %v1146_v42  ;;  %v1407_v62 = vpack.c.bf16 %v5233_v39, %v5222_v40  ;;  %3842 = vmatprep.mubr.bf16.mxu0 %v1406_v35  ;;  %3857 = vmatpush3.bf16.msra.mxu0 %v5208_v28 }
 0x232   :  { %v1267_v49 = vld [vmem:[#allocation2 + $0x12] sm:$0x1]  ;;  %1249 = vst [vmem:[#allocation2 + $0xd1] sm:$0xff] %v5233_v39  ;;  %v1180_v60 = vmul.f32 0.2, %v1148_v10  ;;  %v5243_v41 = vsel %vm1161_vm12, %v1145_v3, %v1177_v4  ;;  %v1717_v12 = vld [vmem:[#allocation2 + $0x2] sm:$0xff]  ;;  %3858 = vmatprep.subr.bf16.mxu0 %v5225_v19 }
 0x233   :  { %1287 = vst [vmem:[#allocation2 + $0x10] sm:$0x1] %v1267_v49  ;;  %v1268_v0 = vld [vmem:[#allocation2 + $0x22] sm:$0x1]  ;;  %v1269_v8 = vld [vmem:[#allocation2 + $0x32] sm:$0x1]  ;;  %v5246_v46 = vsel %vm1162_vm13, %v1146_v42, %v1178_v48 }
 0x234   :  { %1288 = vst [vmem:[#allocation2 + $0x20] sm:$0x1] %v1268_v0  ;;  %1289 = vst [vmem:[#allocation2 + $0x30] sm:$0x1] %v1269_v8  ;;  %v1270_v56 = vld [vmem:[#allocation2 + $0x42] sm:$0x1]  ;;  %v1408_v31 = vpack.c.bf16 %v5246_v46, %v5243_v41  ;;  %v5259_v14 = vsel %vm1164_vm14, %v1148_v10, %v1180_v60  ;;  %3843 = vmatmul.mubr.bf16.gmra.mrb[24].mxu0 %v1407_v62 }
 0x235   :  { %v1271_v6 = vld [vmem:[#allocation2 + $0x52] sm:$0x1]  ;;  %v5252_v2 = vld [vmem:[#allocation2 + $0x22] sm:$0xff]  ;;  %1250 = vst [vmem:[#allocation2 + $0xe1] sm:$0xff] %v5243_v41  ;;  %1251 = vst [vmem:[#allocation2 + $0xf1] sm:$0xff] %v5246_v46  ;;  %vm1165_vm0 = vcmp.ge.f32.partialorder %v1149_v33, 0.0  ;;  %v1409_v27 = vpack.c.bf16 %v5259_v14, %v5131_v38  ;;  %3859 = vmatpush3.bf16.msra.mxu0 %v5225_v19 }
 0x236   :  { %v5250_v37 = vld [vmem:[#allocation2 + $0x12] sm:$0xff]  ;;  %1290 = vst [vmem:[#allocation2 + $0x40] sm:$0x1] %v1270_v56  ;;  %1291 = vst [vmem:[#allocation2 + $0x50] sm:$0x1] %v1271_v6  ;;  %v5277_v58 = vld [vmem:[#allocation2 + $0x42] sm:$0xff]  ;;  %3846 = vmatprep.mubr.bf16.mxu0 %v1408_v31 }
 0x237   :  { %v1173_v11 = vmul.f32 0.2, %v1141_v26  ;;  %v1733_v5 = vpack.c.bf16 %v5250_v37, %v1717_v12  ;;  %v5262_v13 = vld [vmem:[#allocation2 + $0x32] sm:$0xff]  ;;  %1253 = vst [vmem:[#allocation2 + $0x111] sm:$0xff] %v5259_v14  ;;  %v1272_v52 = vld [vmem:[#allocation2 + $0x62] sm:$0x1] }
 0x238   :  { %v1273_v63 = vld [vmem:[#allocation2 + $0x72] sm:$0x1]  ;;  %1265 = vst [vmem:[#allocation2 + $0x131] sm:$0xff] %v5259_v14  ;;  %v5275_v18 = vpack.c.bf16 %v5262_v13, %v5252_v2  ;;  %v4380_v21 = vld [vmem:[#allocation11 + $0xc8] sm:$0xff]   ;;  %1292 = vst [vmem:[#allocation2 + $0x60] sm:$0x1] %v1272_v52 }
 0x239   :  { %v5279_v43 = vld [vmem:[#allocation2 + $0x52] sm:$0xff]  ;;  %1293 = vst [vmem:[#allocation2 + $0x70] sm:$0x1] %v1273_v63  ;;  %v5283_v28 = vsel %vm1157_vm15, %v1141_v26, %v1173_v11  ;;  %v1181_v61 = vmul.f32 0.2, %v1149_v33  ;;  %3898 = vmatprep.mubr.bf16.mxu1 %v1733_v5  ;;  %v5297_v34 = vld [vmem:[#allocation2 + $0x62] sm:$0xff] }
 0x23a   :  { %v5287_v3 = vpack.c.bf16 %v5279_v43, %v5277_v58  ;;  %v1317_v42 = vld [vmem:[#allocation2 + $0xb7] sm:$0x1]  ;;  %v1277_v24 = vld [vmem:[#allocation2 + $0xb2] sm:$0x1]  ;;  %1246 = vst [vmem:[#allocation2 + $0x81] sm:$0xff] %v5283_v28  ;;  %3899 = vmatmul.mubr.bf16.vlgmr.msra.gmra.mrb[0].mxu1 %v5275_v18  ;;  %v4383_v9 = vld [vmem:[#allocation11 + $0x28] sm:$0xff]   ;;  %v5654_v47 = vpack.c.bf16 %v5283_v28, %v5173_v51 }
 0x23b   :  { %v1316_v7 = vld [vmem:[#allocation2 + $0xa7] sm:$0x1]  ;;  %1337 = vst [vmem:[#allocation2 + $0xb9] sm:$0x1] %v1317_v42  ;;  %1297 = vst [vmem:[#allocation2 + $0xb0] sm:$0x1] %v1277_v24  ;;  %v5300_v10 = vsel %vm1165_vm0, %v1149_v33, %v1181_v61  ;;  %3915 = vmatpush3.bf16.msra.mxu1 %v4988_v57  ;;  %3860 = vmatprep.subr.bf16.mxu0 %v4383_v9 }
 0x23c   :  { %3902 = vmatprep.mubr.bf16.mxu1 %v5287_v3  ;;  %1336 = vst [vmem:[#allocation2 + $0xa9] sm:$0x1] %v1316_v7  ;;  %v1318_v25 = vld [vmem:[#allocation2 + $0xc7] sm:$0x1]  ;;  %v1319_v36 = vld [vmem:[#allocation2 + $0xd7] sm:$0x1]  ;;  %3916 = vmatprep.subr.bf16.mxu1 %v4380_v21 }
 0x23d   :  { %1254 = vst [vmem:[#allocation2 + $0x121] sm:$0xff] %v5300_v10  ;;  %v4382_v26 = vld [vmem:[#allocation11 + $0xd0] sm:$0xff]   ;;  %1338 = vst [vmem:[#allocation2 + $0xc9] sm:$0x1] %v1318_v25  ;;  %v1276_v35 = vld [vmem:[#allocation2 + $0xa2] sm:$0x1]  ;;  %3861 = vmatpush3.bf16.msra.mxu0 %v4383_v9 }
 0x23e   :  { %1339 = vst [vmem:[#allocation2 + $0xd9] sm:$0x1] %v1319_v36  ;;  %v5313_v4 = vld [vmem:[#allocation2 + $0x72] sm:$0xff]  ;;  %v1320_v48 = vld [vmem:[#allocation2 + $0xe7] sm:$0x1]  ;;  %3847 = vmatmul.mubr.bf16.gmra.mrb[28].mxu0 %v1409_v27  ;;  %v5392_v16 = vld [vmem:[#allocation11 + $0x228] sm:$0xff]  }
 0x23f   :  { %v1321_v49 = vld [vmem:[#allocation2 + $0xf7] sm:$0x1]  ;;  %1296 = vst [vmem:[#allocation2 + $0xa0] sm:$0x1] %v1276_v35  ;;  %v4384_v62 = vld [vmem:[#allocation11 + $0xd8] sm:$0xff]   ;;  %v4385_v60 = vld [vmem:[#allocation11 + $0x30] sm:$0xff]   ;;  %3917 = vmatpush3.bf16.msra.mxu1 %v4380_v21  ;;  %v5320_v19 = vpack.c.bf16 %v5313_v4, %v5297_v34 }
 0x240   :  { %1340 = vst [vmem:[#allocation2 + $0xe9] sm:$0x1] %v1320_v48  ;;  %1341 = vst [vmem:[#allocation2 + $0xf9] sm:$0x1] %v1321_v49  ;;  %v1323_v0 = vld [vmem:[#allocation2 + $0x117] sm:$0x1]  ;;  %3918 = vmatprep.subr.bf16.mxu1 %v4382_v26  ;;  %3862 = vmatprep.subr.bf16.mxu0 %v4385_v60 }
 0x241   :  { %v1278_v8 = vld [vmem:[#allocation2 + $0xc2] sm:$0x1]  ;;  %v5316_v56 = vld [vmem:[#allocation2 + $0x10] sm:$0xff]  ;;  %1343 = vst [vmem:[#allocation2 + $0x119] sm:$0x1] %v1323_v0  ;;  %3863 = vmatpush3.bf16.msra.mxu0 %v4385_v60 }
 0x242   :  { %v1346_v33 = vld [vmem:[#allocation2] sm:$0xff]  ;;  %v1279_v6 = vld [vmem:[#allocation2 + $0xd2] sm:$0x1]  ;;  %1298 = vst [vmem:[#allocation2 + $0xc0] sm:$0x1] %v1278_v8  ;;  %3903 = vmatmul.mubr.bf16.gmra.mrb[4].mxu1 %v5320_v19  ;;  %v4386_v48 = vld [vmem:[#allocation11 + $0xe0] sm:$0xff]  }
 0x243   :  { %v4387_v12 = vld [vmem:[#allocation11 + $0x38] sm:$0xff]   ;;  %1299 = vst [vmem:[#allocation2 + $0xd0] sm:$0x1] %v1279_v6  ;;  %v1274_v31 = vld [vmem:[#allocation2 + $0x82] sm:$0x1]  ;;  %v1362_v42 = vpack.c.bf16 %v5316_v56, %v1346_v33  ;;  %3919 = vmatpush3.bf16.msra.mxu1 %v4382_v26  ;;  %v5342_v0 = vld [vmem:[#allocation11 + $0x200] sm:$0xff]  }
 0x244   :  { %v1280_v11 = vld [vmem:[#allocation2 + $0xe2] sm:$0x1]  ;;  %v1281_v5 = vld [vmem:[#allocation2 + $0xf2] sm:$0x1]  ;;  %1294 = vst [vmem:[#allocation2 + $0x80] sm:$0x1] %v1274_v31  ;;  %3920 = vmatprep.subr.bf16.mxu1 %v4384_v62  ;;  %3864 = vmatprep.subr.bf16.mxu0 %v4387_v12 }
 0x245   :  { %v5322_v52 = vld [vmem:[#allocation2 + $0xb2] sm:$0xff]  ;;  %v5324_v63 = vld [vmem:[#allocation2 + $0x102] sm:$0xff]  ;;  %1300 = vst [vmem:[#allocation2 + $0xe0] sm:$0x1] %v1280_v11  ;;  %1301 = vst [vmem:[#allocation2 + $0xf0] sm:$0x1] %v1281_v5  ;;  %3866 = vmatprep.mubr.bf16.mxu0 %v1362_v42  ;;  %3865 = vmatpush3.bf16.msra.mxu0 %v4387_v12 }
 0x246   :  { %v1283_v21 = vld [vmem:[#allocation2 + $0x112] sm:$0x1]  ;;  %v1725_v61 = vld [vmem:[#allocation2 + $0xa2] sm:$0xff]  ;;  %v1315_v35 = vld [vmem:[#allocation2 + $0x97] sm:$0x1]  ;;  %4074 = vmatprep.subr.bf16.mxu0 %v5342_v0 }
 0x247   :  { %1303 = vst [vmem:[#allocation2 + $0x110] sm:$0x1] %v1283_v21  ;;  %v1284_v24 = vld [vmem:[#allocation2 + $0x122] sm:$0x1]  ;;  %v1314_v7 = vld [vmem:[#allocation2 + $0x87] sm:$0x1]  ;;  %v1737_v9 = vpack.c.bf16 %v5322_v52, %v1725_v61  ;;  %3921 = vmatpush3.bf16.msra.mxu1 %v4384_v62 }
 0x248   :  { %v5332_v25 = vld [vmem:[#allocation2 + $0xc2] sm:$0xff]  ;;  %v5334_v36 = vld [vmem:[#allocation2 + $0xd2] sm:$0xff]  ;;  %1304 = vst [vmem:[#allocation2 + $0x120] sm:$0x1] %v1284_v24  ;;  %1334 = vst [vmem:[#allocation2 + $0x89] sm:$0x1] %v1314_v7  ;;  %3922 = vmatprep.subr.bf16.mxu1 %v4386_v48 }
 0x249   :  { %1335 = vst [vmem:[#allocation2 + $0x99] sm:$0x1] %v1315_v35  ;;  %v1324_v27 = vld [vmem:[#allocation2 + $0x127] sm:$0x1]  ;;  %3906 = vmatprep.mubr.bf16.mxu1 %v1737_v9  ;;  %v5340_v26 = vld [vmem:[#allocation2 + $0xf2] sm:$0xff]  ;;  %v1738_v60 = vpack.c.bf16 %v5334_v36, %v5332_v25  ;;  %v4388_v5 = vld [vmem:[#allocation11 + $0xe8] sm:$0xff]  }
 0x24a   :  { %v5338_v49 = vld [vmem:[#allocation2 + $0xe2] sm:$0xff]  ;;  %1344 = vst [vmem:[#allocation2 + $0x129] sm:$0x1] %v1324_v27  ;;  %v5348_v31 = vld [vmem:[#allocation2 + $0x30] sm:$0xff] }
 0x24b   :  { %v1348_v6 = vld [vmem:[#allocation2 + $0x20] sm:$0xff]  ;;  %v1275_v11 = vld [vmem:[#allocation2 + $0x92] sm:$0x1]  ;;  %v1739_v42 = vpack.c.bf16 %v5340_v26, %v5338_v49  ;;  %3907 = vmatmul.mubr.bf16.gmra.mrb[8].mxu1 %v1738_v60  ;;  %v1325_v33 = vld [vmem:[#allocation2 + $0x137] sm:$0x1] }
 0x24c   :  { %v1350_v21 = vld [vmem:[#allocation2 + $0x40] sm:$0xff]  ;;  %v1351_v61 = vld [vmem:[#allocation2 + $0x50] sm:$0xff]  ;;  %1295 = vst [vmem:[#allocation2 + $0x90] sm:$0x1] %v1275_v11  ;;  %v5355_v24 = vpack.c.bf16 %v5348_v31, %v1348_v6  ;;  %3923 = vmatpush3.bf16.msra.mxu1 %v4386_v48  ;;  %v1935_v17 = vpack.c.bf16 %v1348_v6, %v5316_v56  ;;  %1345 = vst [vmem:[#allocation2 + $0x139] sm:$0x1] %v1325_v33 }
 0x24d   :  { %v5358_v62 = vld [vmem:[#allocation11 + $0x208] sm:$0xff]   ;;  %3910 = vmatprep.mubr.bf16.mxu1 %v1739_v42  ;;  %v5360_v7 = vpack.c.bf16 %v1351_v61, %v1350_v21  ;;  %v1285_v9 = vld [vmem:[#allocation2 + $0x132] sm:$0x1]  ;;  %3924 = vmatprep.subr.bf16.mxu1 %v4388_v5  ;;  %v4389_v35 = vld [vmem:[#allocation11 + $0xf0] sm:$0xff]   ;;  %v1936_v44 = vpack.c.bf16 %v1350_v21, %v5348_v31 }
 0x24e   :  { %3867 = vmatmul.mubr.bf16.vlgmr.msra.gmra.mrb[16].mxu0 %v5355_v24  ;;  %1305 = vst [vmem:[#allocation2 + $0x130] sm:$0x1] %v1285_v9  ;;  %v5363_v27 = vld [vmem:[#allocation2 + $0x112] sm:$0xff]  ;;  %v5368_v12 = vld [vmem:[#allocation11 + $0x210] sm:$0xff]   ;;  %v4395_v33 = vld [vmem:[#allocation11 + $0x108] sm:$0xff]  }
 0x24f   :  { %3870 = vmatprep.mubr.bf16.mxu0 %v5360_v7  ;;  %4075 = vmatpush3.bf16.msra.mxu0 %v5342_v0  ;;  %v1352_v48 = vld [vmem:[#allocation2 + $0x60] sm:$0xff]  ;;  %v1353_v11 = vld [vmem:[#allocation2 + $0x70] sm:$0xff]  ;;  %v5372_v60 = vpack.c.bf16 %v5363_v27, %v5324_v63 }
 0x250   :  { %4076 = vmatprep.subr.bf16.mxu0 %v5358_v62  ;;  %3925 = vmatpush3.bf16.msra.mxu1 %v4388_v5  ;;  %v4391_v42 = vld [vmem:[#allocation11 + $0xf8] sm:$0xff]   ;;  %v1354_v9 = vld [vmem:[#allocation2 + $0xa0] sm:$0xff]  ;;  %v5377_v8 = vpack.c.bf16 %v1353_v11, %v1352_v48  ;;  %v4393_v20 = vld [vmem:[#allocation11 + $0x100] sm:$0xff]  }
 0x251   :  { %3926 = vmatprep.subr.bf16.mxu1 %v4389_v35  ;;  %v1355_v57 = vld [vmem:[#allocation2 + $0xb0] sm:$0xff]  ;;  %v1356_v6 = vld [vmem:[#allocation2 + $0xc0] sm:$0xff] }
 0x252   :  { %v5380_v5 = vld [vmem:[#allocation11 + $0x218] sm:$0xff]   ;;  %v1366_v38 = vpack.c.bf16 %v1355_v57, %v1354_v9  ;;  %v5385_v56 = vld [vmem:[#allocation11 + $0x220] sm:$0xff]   ;;  %v1937_v9 = vpack.c.bf16 %v1352_v48, %v1351_v61  ;;  %v4397_v31 = vld [vmem:[#allocation11 + $0x110] sm:$0xff]   ;;  %v1939_v15 = vpack.c.bf16 %v1356_v6, %v1355_v57 }
 0x253   :  { %4077 = vmatpush3.bf16.msra.mxu0 %v5358_v62  ;;  %3911 = vmatmul.mubr.bf16.gmra.mrb[12].mxu1 %v5372_v60  ;;  %v1357_v32 = vld [vmem:[#allocation2 + $0xd0] sm:$0xff]  ;;  %v5397_v21 = vld [vmem:[#allocation2 + $0x80] sm:$0xff] }
 0x254   :  { %4078 = vmatprep.subr.bf16.mxu0 %v5368_v12  ;;  %3927 = vmatpush3.bf16.msra.mxu1 %v4389_v35  ;;  %v1359_v35 = vld [vmem:[#allocation2 + $0xf0] sm:$0xff]  ;;  %v1360_v61 = vld [vmem:[#allocation2 + $0x100] sm:$0xff] }
 0x255   :  { %3930 = vmatprep.mubr.bf16.mxu1 %v1935_v17  ;;  %3928 = vmatprep.subr.bf16.mxu1 %v4391_v42  ;;  %v1358_v17 = vld [vmem:[#allocation2 + $0xe0] sm:$0xff]  ;;  %v1361_v48 = vld [vmem:[#allocation2 + $0x110] sm:$0xff] }
 0x256   :  { %3871 = vmatmul.mubr.bf16.gmra.mrb[20].mxu0 %v5377_v8  ;;  %v5406_v1 = vpack.c.bf16 %v1361_v48, %v1360_v61  ;;  %v5409_v55 = vld [vmem:[#allocation11 + $0x238] sm:$0xff]   ;;  %v1940_v57 = vpack.c.bf16 %v1358_v17, %v1357_v32  ;;  %v4411_v53 = vld [vmem:[#allocation11 + $0x160] sm:$0xff]   ;;  %v5436_v50 = vld [vmem:[#allocation2 + $0x101] sm:$0xff] }
 0x257   :  { %3874 = vmatprep.mubr.bf16.mxu0 %v1366_v38  ;;  %4079 = vmatpush3.bf16.msra.mxu0 %v5368_v12  ;;  %v5389_v38 = vpack.c.bf16 %v1357_v32, %v1356_v6  ;;  %v1941_v6 = vpack.c.bf16 %v1360_v61, %v1359_v35  ;;  %v4409_v61 = vld [vmem:[#allocation11 + $0x150] sm:$0xff]   ;;  %v4410_v45 = vld [vmem:[#allocation11 + $0x158] sm:$0xff]   ;;  %v4412_v59 = vld [vmem:[#allocation11 + $0x168] sm:$0xff]   ;;  %v2143_v30 = vpack.c.bf16 %v5436_v50, %v5246_v46 }
 0x258   :  { %4080 = vmatprep.subr.bf16.mxu0 %v5380_v5  ;;  %3929 = vmatpush3.bf16.msra.mxu1 %v4391_v42  ;;  %v5394_v42 = vpack.c.bf16 %v1359_v35, %v1358_v17  ;;  %v4406_v17 = vld [vmem:[#allocation11 + $0x138] sm:$0xff]   ;;  %v4415_v46 = vld [vmem:[#allocation11 + $0x180] sm:$0xff]  }
 0x259   :  { %3946 = vmatprep.subr.bf16.mxu1 %v4393_v20 }
 0x25b   :  { %4081 = vmatpush3.bf16.msra.mxu0 %v5380_v5  ;;  %3931 = vmatmul.mubr.bf16.vlgmr.msra.gmra.mrb[0].mxu1 %v1936_v44  ;;  %v5402_v44 = vld [vmem:[#allocation11 + $0x230] sm:$0xff]  }
 0x25c   :  { %4082 = vmatprep.subr.bf16.mxu0 %v5385_v56  ;;  %3934 = vmatprep.mubr.bf16.mxu1 %v1937_v9  ;;  %v4399_v9 = vld [vmem:[#allocation11 + $0x118] sm:$0xff]  }
 0x25d   :  { %3947 = vmatpush3.bf16.msra.mxu1 %v4393_v20  ;;  %v1938_v20 = vpack.c.bf16 %v5397_v21, %v1353_v11  ;;  %v4403_v11 = vld [vmem:[#allocation11 + $0x128] sm:$0xff]  }
 0x25e   :  { %3948 = vmatprep.subr.bf16.mxu1 %v4395_v33  ;;  %3875 = vmatmul.mubr.bf16.gmra.mrb[24].mxu0 %v5389_v38 }
 0x25f   :  { %3878 = vmatprep.mubr.bf16.mxu0 %v5394_v42  ;;  %4083 = vmatpush3.bf16.msra.mxu0 %v5385_v56 }
 0x260   :  { %4084 = vmatprep.subr.bf16.mxu0 %v5392_v16 }
 0x261   :  { %3949 = vmatpush3.bf16.msra.mxu1 %v4395_v33  ;;  %v4401_v33 = vld [vmem:[#allocation11 + $0x120] sm:$0xff]  }
 0x262   :  { %3950 = vmatprep.subr.bf16.mxu1 %v4397_v31 }
 0x263   :  { %4085 = vmatpush3.bf16.msra.mxu0 %v5392_v16  ;;  %3935 = vmatmul.mubr.bf16.gmra.mrb[4].mxu1 %v1938_v20  ;;  %v2936_v20 = vld [vmem:[#allocation2 + $0x92] sm:$0xff] }
 0x264   :  { %4086 = vmatprep.subr.bf16.mxu0 %v5402_v44  ;;  %3938 = vmatprep.mubr.bf16.mxu1 %v1939_v15  ;;  %v4405_v15 = vld [vmem:[#allocation11 + $0x130] sm:$0xff]  }
 0x265   :  { %3951 = vmatpush3.bf16.msra.mxu1 %v4397_v31  ;;  %v5417_v31 = vld [vmem:[#allocation2 + $0x120] sm:$0xff] }
 0x266   :  { %3952 = vmatprep.subr.bf16.mxu1 %v4399_v9  ;;  %3879 = vmatmul.mubr.bf16.gmra.mrb[28].mxu0 %v5406_v1  ;;  %v1942_v32 = vpack.c.bf16 %v5417_v31, %v1361_v48  ;;  %v5658_v48 = vpack.c.bf16 %v5252_v2, %v5250_v37  ;;  %v4418_v2 = vld [vmem:[#allocation11 + $0x198] sm:$0xff]  }
 0x267   :  { %4087 = vmatpush3.bf16.msra.mxu0 %v5402_v44  ;;  %4090 = vmatprep.mubr.bf16.mxu0 %v5275_v18  ;;  %v2935_v18 = vld [vmem:[#allocation2 + $0x82] sm:$0xff] }
 0x268   :  { %4088 = vmatprep.subr.bf16.mxu0 %v5409_v55  ;;  %v2948_v35 = vpack.c.bf16 %v2936_v20, %v2935_v18  ;;  %v2342_v37 = vpack.c.bf16 %v2935_v18, %v5313_v4  ;;  %v4421_v4 = vld [vmem:[#allocation11 + $0x1b0] sm:$0xff]   ;;  %v2728_v18 = vld [vmem:[#allocation2 + $0x31] sm:$0xff] }
 0x269   :  { %3953 = vmatpush3.bf16.msra.mxu1 %v4399_v9  ;;  %v5660_v9 = vpack.c.bf16 %v5297_v34, %v5279_v43  ;;  %v5662_v43 = vpack.c.bf16 %v5338_v49, %v5334_v36  ;;  %v5663_v34 = vpack.c.bf16 %v5324_v63, %v5340_v26  ;;  %v4423_v36 = vld [vmem:[#allocation11 + $0x1c0] sm:$0xff]   ;;  %v4424_v63 = vld [vmem:[#allocation11 + $0x1c8] sm:$0xff]   ;;  %v4425_v49 = vld [vmem:[#allocation11 + $0x1d0] sm:$0xff]  }
 0x26a   :  { %3954 = vmatprep.subr.bf16.mxu1 %v4401_v33  ;;  %v2532_v26 = vld [vmem:[#allocation2 + $0x90] sm:$0xff] }
 0x26b   :  { %4089 = vmatpush3.bf16.msra.mxu0 %v5409_v55  ;;  %3939 = vmatmul.mubr.bf16.gmra.mrb[8].mxu1 %v1940_v57  ;;  %v5661_v57 = vpack.c.bf16 %v5332_v25, %v5322_v52  ;;  %v4422_v25 = vld [vmem:[#allocation11 + $0x1b8] sm:$0xff]  }
 0x26c   :  { %3942 = vmatprep.mubr.bf16.mxu1 %v1941_v6  ;;  %v4426_v6 = vld [vmem:[#allocation11 + $0x1d8] sm:$0xff]  }
 0x26d   :  { %3955 = vmatpush3.bf16.msra.mxu1 %v4401_v33  ;;  %v4417_v33 = vld [vmem:[#allocation11 + $0x190] sm:$0xff]  }
 0x26e   :  { %3956 = vmatprep.subr.bf16.mxu1 %v4403_v11  ;;  %4091 = vmatmul.mubr.bf16.vlgmr.msra.gmra.mrb[32].mxu0 %v5287_v3  ;;  %v4407_v3 = vld [vmem:[#allocation11 + $0x140] sm:$0xff]  }
 0x26f   :  { %4094 = vmatprep.mubr.bf16.mxu0 %v5320_v19  ;;  %v4408_v19 = vld [vmem:[#allocation11 + $0x148] sm:$0xff]  }
 0x271   :  { %3957 = vmatpush3.bf16.msra.mxu1 %v4403_v11  ;;  %v5465_v11 = vld [vmem:[#allocation2 + $0x122] sm:$0xff] }
 0x272   :  { %3958 = vmatprep.subr.bf16.mxu1 %v4405_v15  ;;  %v2346_v52 = vpack.c.bf16 %v5465_v11, %v5363_v27  ;;  %v2544_v27 = vpack.c.bf16 %v2532_v26, %v5397_v21  ;;  %v2727_v21 = vld [vmem:[#allocation2 + $0x21] sm:$0xff] }
 0x273   :  { %3943 = vmatmul.mubr.bf16.gmra.mrb[12].mxu1 %v1942_v32  ;;  %v2743_v32 = vpack.c.bf16 %v2728_v18, %v2727_v21 }
 0x274   :  { %3962 = vmatprep.mubr.bf16.mxu1 %v2137_v22  ;;  %v5655_v22 = vpack.c.bf16 %v5222_v40, %v5219_v23  ;;  %v4413_v23 = vld [vmem:[#allocation11 + $0x170] sm:$0xff]   ;;  %v4414_v40 = vld [vmem:[#allocation11 + $0x178] sm:$0xff]  }
 0x275   :  { %3959 = vmatpush3.bf16.msra.mxu1 %v4405_v15  ;;  %v2540_v15 = vld [vmem:[#allocation2 + $0x130] sm:$0xff] }
 0x276   :  { %3960 = vmatprep.subr.bf16.mxu1 %v4406_v17  ;;  %4095 = vmatmul.mubr.bf16.gmra.mrb[36].mxu0 %v2948_v35  ;;  %v2548_v20 = vpack.c.bf16 %v2540_v15, %v5417_v31  ;;  %v2731_v35 = vld [vmem:[#allocation2 + $0x61] sm:$0xff] }
 0x277   :  { %v2735_v31 = vld [vmem:[#allocation2 + $0xc1] sm:$0xff] }
 0x279   :  { %3961 = vmatpush3.bf16.msra.mxu1 %v4406_v17  ;;  %v2729_v17 = vld [vmem:[#allocation2 + $0x41] sm:$0xff] }
 0x27a   :  { %3978 = vmatprep.subr.bf16.mxu1 %v4407_v3 }
 0x27c   :  { %3963 = vmatmul.mubr.bf16.vlgmr.msra.gmra.mrb[0].mxu1 %v2138_v29  ;;  %v5656_v29 = vpack.c.bf16 %v5243_v41, %v5233_v39  ;;  %v4416_v39 = vld [vmem:[#allocation11 + $0x188] sm:$0xff]   ;;  %v5659_v41 = vpack.c.bf16 %v5277_v58, %v5262_v13  ;;  %v4419_v13 = vld [vmem:[#allocation11 + $0x1a0] sm:$0xff]  }
 0x27d   :  { %3966 = vmatprep.mubr.bf16.mxu1 %v2139_v54  ;;  %3979 = vmatpush3.bf16.msra.mxu1 %v4407_v3  ;;  %v5657_v54 = vpack.c.bf16 %v5300_v10, %v5259_v14  ;;  %v4420_v58 = vld [vmem:[#allocation11 + $0x1a8] sm:$0xff]  }
 0x27e   :  { %3980 = vmatprep.subr.bf16.mxu1 %v4408_v19 }
 0x281   :  { %3981 = vmatpush3.bf16.msra.mxu1 %v4408_v19 }
 0x282   :  { %3982 = vmatprep.subr.bf16.mxu1 %v4409_v61 }
 0x284   :  { %3967 = vmatmul.mubr.bf16.gmra.mrb[4].mxu1 %v5654_v47  ;;  %v5664_v47 = vpack.c.bf16 %v5173_v51, %v5283_v28  ;;  %v2937_v51 = vld [vmem:[#allocation2 + $0xc2] sm:$0xff]  ;;  %v2938_v28 = vld [vmem:[#allocation2 + $0xd2] sm:$0xff] }
 0x285   :  { %3970 = vmatprep.mubr.bf16.mxu1 %v5655_v22  ;;  %3983 = vmatpush3.bf16.msra.mxu1 %v4409_v61  ;;  %v2736_v61 = vld [vmem:[#allocation2 + $0xd1] sm:$0xff]  ;;  %v2737_v22 = vld [vmem:[#allocation2 + $0xe1] sm:$0xff] }
 0x286   :  { %3984 = vmatprep.subr.bf16.mxu1 %v4410_v45 }
 0x289   :  { %3985 = vmatpush3.bf16.msra.mxu1 %v4410_v45  ;;  %v2747_v45 = vpack.c.bf16 %v2736_v61, %v2735_v31 }
 0x28a   :  { %3986 = vmatprep.subr.bf16.mxu1 %v4411_v53 }
 0x28c   :  { %3971 = vmatmul.mubr.bf16.gmra.mrb[8].mxu1 %v5656_v29 }
 0x28d   :  { %3974 = vmatprep.mubr.bf16.mxu1 %v2143_v30  ;;  %3987 = vmatpush3.bf16.msra.mxu1 %v4411_v53  ;;  %v2740_v53 = vld [vmem:[#allocation2 + $0x111] sm:$0xff] }
 0x28e   :  { %3988 = vmatprep.subr.bf16.mxu1 %v4412_v59 }
 0x291   :  { %3989 = vmatpush3.bf16.msra.mxu1 %v4412_v59 }
 0x292   :  { %3990 = vmatprep.subr.bf16.mxu1 %v4413_v23 }
 0x294   :  { %3975 = vmatmul.mubr.bf16.gmra.mrb[12].mxu1 %v5657_v54 }
 0x295   :  { %3991 = vmatpush3.bf16.msra.mxu1 %v4413_v23  ;;  %3994 = vmatprep.mubr.bf16.mxu1 %v5658_v48 }
 0x296   :  { %3992 = vmatprep.subr.bf16.mxu1 %v4414_v40 }
 0x299   :  { %3993 = vmatpush3.bf16.msra.mxu1 %v4414_v40 }
 0x29a   :  { %4010 = vmatprep.subr.bf16.mxu1 %v4415_v46 }
 0x29c   :  { %3995 = vmatmul.mubr.bf16.vlgmr.msra.gmra.mrb[0].mxu1 %v5659_v41 }
 0x29d   :  { %3998 = vmatprep.mubr.bf16.mxu1 %v5660_v9  ;;  %4011 = vmatpush3.bf16.msra.mxu1 %v4415_v46 }
 0x29e   :  { %4012 = vmatprep.subr.bf16.mxu1 %v4416_v39 }
 0x2a1   :  { %4013 = vmatpush3.bf16.msra.mxu1 %v4416_v39 }
 0x2a2   :  { %4014 = vmatprep.subr.bf16.mxu1 %v4417_v33 }
 0x2a4   :  { %3999 = vmatmul.mubr.bf16.gmra.mrb[4].mxu1 %v2342_v37 }
 0x2a5   :  { %4002 = vmatprep.mubr.bf16.mxu1 %v5661_v57  ;;  %4015 = vmatpush3.bf16.msra.mxu1 %v4417_v33 }
 0x2a6   :  { %4016 = vmatprep.subr.bf16.mxu1 %v4418_v2 }
 0x2a9   :  { %4017 = vmatpush3.bf16.msra.mxu1 %v4418_v2 }
 0x2aa   :  { %4018 = vmatprep.subr.bf16.mxu1 %v4419_v13 }
 0x2ac   :  { %4003 = vmatmul.mubr.bf16.gmra.mrb[8].mxu1 %v5662_v43 }
 0x2ad   :  { %4006 = vmatprep.mubr.bf16.mxu1 %v5663_v34  ;;  %4019 = vmatpush3.bf16.msra.mxu1 %v4419_v13 }
 0x2ae   :  { %4020 = vmatprep.subr.bf16.mxu1 %v4420_v58 }
 0x2b1   :  { %4021 = vmatpush3.bf16.msra.mxu1 %v4420_v58 }
 0x2b2   :  { %4022 = vmatprep.subr.bf16.mxu1 %v4421_v4 }
 0x2b4   :  { %4007 = vmatmul.mubr.bf16.gmra.mrb[12].mxu1 %v2346_v52 }
 0x2b5   :  { %4023 = vmatpush3.bf16.msra.mxu1 %v4421_v4  ;;  %4026 = vmatprep.mubr.bf16.mxu1 %v5355_v24  ;;  %v4427_v24 = vld [vmem:[#allocation11 + $0x1e0] sm:$0xff]  }
 0x2b6   :  { %4024 = vmatprep.subr.bf16.mxu1 %v4422_v25 }
 0x2b9   :  { %4025 = vmatpush3.bf16.msra.mxu1 %v4422_v25 }
 0x2ba   :  { %4042 = vmatprep.subr.bf16.mxu1 %v4423_v36 }
 0x2bc   :  { %4027 = vmatmul.mubr.bf16.vlgmr.msra.gmra.mrb[0].mxu1 %v5360_v7  ;;  %v4428_v7 = vld [vmem:[#allocation11 + $0x1e8] sm:$0xff]  }
 0x2bd   :  { %4030 = vmatprep.mubr.bf16.mxu1 %v5377_v8  ;;  %4043 = vmatpush3.bf16.msra.mxu1 %v4423_v36  ;;  %v4429_v8 = vld [vmem:[#allocation11 + $0x1f0] sm:$0xff]  }
 0x2be   :  { %4044 = vmatprep.subr.bf16.mxu1 %v4424_v63 }
 0x2c1   :  { %4045 = vmatpush3.bf16.msra.mxu1 %v4424_v63 }
 0x2c2   :  { %4046 = vmatprep.subr.bf16.mxu1 %v4425_v49 }
 0x2c4   :  { %4031 = vmatmul.mubr.bf16.gmra.mrb[4].mxu1 %v2544_v27 }
 0x2c5   :  { %4034 = vmatprep.mubr.bf16.mxu1 %v5389_v38  ;;  %4047 = vmatpush3.bf16.msra.mxu1 %v4425_v49  ;;  %v4430_v38 = vld [vmem:[#allocation11 + $0x1f8] sm:$0xff]  }
 0x2c6   :  { %4048 = vmatprep.subr.bf16.mxu1 %v4426_v6 }
 0x2c9   :  { %4049 = vmatpush3.bf16.msra.mxu1 %v4426_v6 }
 0x2ca   :  { %4050 = vmatprep.subr.bf16.mxu1 %v4427_v24 }
 0x2cc   :  { %4035 = vmatmul.mubr.bf16.gmra.mrb[8].mxu1 %v5394_v42  ;;  %v2730_v42 = vld [vmem:[#allocation2 + $0x51] sm:$0xff] }
 0x2cd   :  { %4038 = vmatprep.mubr.bf16.mxu1 %v5406_v1  ;;  %4051 = vmatpush3.bf16.msra.mxu1 %v4427_v24  ;;  %v2732_v1 = vld [vmem:[#allocation2 + $0x71] sm:$0xff]  ;;  %v2744_v3 = vpack.c.bf16 %v2730_v42, %v2729_v17 }
 0x2ce   :  { %4052 = vmatprep.subr.bf16.mxu1 %v4428_v7  ;;  %v2745_v19 = vpack.c.bf16 %v2732_v1, %v2731_v35 }
 0x2d1   :  { %4053 = vmatpush3.bf16.msra.mxu1 %v4428_v7 }
 0x2d2   :  { %4054 = vmatprep.subr.bf16.mxu1 %v4429_v8 }
 0x2d4   :  { %4039 = vmatmul.mubr.bf16.gmra.mrb[12].mxu1 %v2548_v20 }
 0x2d5   :  { %4055 = vmatpush3.bf16.msra.mxu1 %v4429_v8  ;;  %4058 = vmatprep.mubr.bf16.mxu1 %v2743_v32 }
 0x2d6   :  { %4056 = vmatprep.subr.bf16.mxu1 %v4430_v38 }
 0x2d9   :  { %4057 = vmatpush3.bf16.msra.mxu1 %v4430_v38 }
 0x2da   :  { %4106 = vmatprep.subr.bf16.mxu1 %v5342_v0 }
 0x2dc   :  { %4059 = vmatmul.mubr.bf16.vlgmr.msra.gmra.mrb[0].mxu1 %v2744_v3 }
 0x2dd   :  { %4062 = vmatprep.mubr.bf16.mxu1 %v2745_v19  ;;  %4114 = vmatpush3.bf16.msra.mxu1 %v5342_v0  ;;  %v2738_v0 = vld [vmem:[#allocation2 + $0xf1] sm:$0xff] }
 0x2de   :  { %4107 = vmatprep.subr.bf16.mxu1 %v5358_v62  ;;  %v2748_v59 = vpack.c.bf16 %v2738_v0, %v2737_v22 }
 0x2e1   :  { %4115 = vmatpush3.bf16.msra.mxu1 %v5358_v62  ;;  %v2749_v62 = vpack.c.bf16 %v2740_v53, %v5436_v50  ;;  %v2939_v50 = vld [vmem:[#allocation2 + $0xe2] sm:$0xff] }
 0x2e2   :  { %4108 = vmatprep.subr.bf16.mxu1 %v5368_v12 }
 0x2e4   :  { %4063 = vmatmul.mubr.bf16.gmra.mrb[4].mxu1 %v5664_v47 }
 0x2e5   :  { %4066 = vmatprep.mubr.bf16.mxu1 %v2747_v45  ;;  %4116 = vmatpush3.bf16.msra.mxu1 %v5368_v12  ;;  %v2949_v12 = vpack.c.bf16 %v2938_v28, %v2937_v51 }
 0x2e6   :  { %4109 = vmatprep.subr.bf16.mxu1 %v5380_v5 }
 0x2e9   :  { %4117 = vmatpush3.bf16.msra.mxu1 %v5380_v5  ;;  %v5665_v5 = vpack.c.bf16 %v5259_v14, %v5300_v10 }
 0x2ea   :  { %4110 = vmatprep.subr.bf16.mxu1 %v5385_v56 }
 0x2ec   :  { %4067 = vmatmul.mubr.bf16.gmra.mrb[8].mxu1 %v2748_v59 }
 0x2ed   :  { %4070 = vmatprep.mubr.bf16.mxu1 %v2749_v62  ;;  %4118 = vmatpush3.bf16.msra.mxu1 %v5385_v56  ;;  %v2940_v56 = vld [vmem:[#allocation2 + $0xf2] sm:$0xff] }
 0x2ee   :  { %4111 = vmatprep.subr.bf16.mxu1 %v5392_v16  ;;  %v2950_v30 = vpack.c.bf16 %v2940_v56, %v2939_v50 }
 0x2f1   :  { %4119 = vmatpush3.bf16.msra.mxu1 %v5392_v16  ;;  %v2944_v16 = vld [vmem:[#allocation2 + $0x132] sm:$0xff] }
 0x2f2   :  { %4112 = vmatprep.subr.bf16.mxu1 %v5402_v44  ;;  %v2952_v29 = vpack.c.bf16 %v2944_v16, %v5465_v11 }
 0x2f4   :  { %4071 = vmatmul.mubr.bf16.gmra.mrb[12].mxu1 %v5665_v5 }
 0x2f5   :  { %4120 = vmatpush3.bf16.msra.mxu1 %v5402_v44  ;;  %4098 = vmatprep.mubr.bf16.mxu1 %v2949_v12 }
 0x2f6   :  { %4113 = vmatprep.subr.bf16.mxu1 %v5409_v55 }
 0x2f9   :  { %4121 = vmatpush3.bf16.msra.mxu1 %v5409_v55 }
 0x2fc   :  { %4099 = vmatmul.mubr.bf16.vlgmr.msra.gmra.mrb[8].mxu1 %v2950_v30 }
 0x2fd   :  { %4102 = vmatprep.mubr.bf16.mxu1 %v5372_v60 }
 0x304   :  { %4103 = vmatmul.mubr.bf16.gmra.mrb[12].mxu1 %v2952_v29 }
 0x321   :  { %v3868_v23 = vpop.f32.mrb[16].mxu0 }
 0x322   :  { %v1654_v14 = vpop.f32.mrb[17].mxu0 }
 0x323   :  { %v3869_v10 = vpop.f32.mrb[18].mxu0 }
 0x324   :  { %v1657_v40 = vpop.f32.mrb[19].mxu0 }
 0x329   :  { %v3872_v44 = vpop.f32.mrb[20].mxu0 }
 0x32a   :  { %v1670_v54 = vpop.f32.mrb[21].mxu0 }
 0x32b   :  { %v3873_v48 = vpop.f32.mrb[22].mxu0 }
 0x32c   :  { %v1673_v46 = vpop.f32.mrb[23].mxu0 }
 0x331   :  { %v5502_v39 = vpop.f32.mrb[24].mxu0 }
 0x332   :  { %v5504_v41 = vpop.f32.mrb[25].mxu0 }
 0x333   :  { %v5506_v55 = vpop.f32.mrb[26].mxu0 }
 0x334   :  { %v5508_v9 = vpop.f32.mrb[27].mxu0 }
 0x339   :  { %v5510_v60 = vpop.f32.mrb[28].mxu0 }
 0x33a   :  { %v5512_v33 = vpop.f32.mrb[29].mxu0 }
 0x33b   :  { %v5514_v37 = vpop.f32.mrb[30].mxu0 }
 0x33c   :  { %v5516_v2 = vpop.f32.mrb[31].mxu0 }
 0x341   :  { %v4092_v57 = vpop.f32.mrb[32].mxu0 }
 0x342   :  { %v3052_v13 = vpop.f32.mrb[33].mxu0 }
 0x343   :  { %v4093_v58 = vpop.f32.mrb[34].mxu0 }
 0x344   :  { %v3055_v43 = vpop.f32.mrb[35].mxu0 }
 0x349   :  { %v4096_v34 = vpop.f32.mrb[36].mxu0 }
 0x34a   :  { %v3068_v4 = vpop.f32.mrb[37].mxu0 }
 0x34b   :  { %v4097_v11 = vpop.f32.mrb[38].mxu0 }
 0x34c   :  { %v3071_v52 = vpop.f32.mrb[39].mxu0 }
 0x3af   :  { %v4060_v25 = vpop.f32.mrb[0].mxu1 }
 0x3b0   :  { %v4122_v36 = vadd.f32 %v4060_v25, %v3868_v23  ;;  %v2850_v63 = vpop.f32.mrb[1].mxu1 }
 0x3b1   :  { %v4124_v49 = vadd.f32 %v2850_v63, %v1654_v14  ;;  %v4061_v26 = vpop.f32.mrb[2].mxu1 }
 0x3b2   :  { %v5518_v27 = vadd.f32 %v4122_v36, %v4092_v57  ;;  %v4126_v6 = vadd.f32 %v4061_v26, %v3869_v10  ;;  %v2853_v24 = vpop.f32.mrb[3].mxu1 }
 0x3b3   :  { %v5520_v7 = vadd.f32 %v4124_v49, %v3052_v13  ;;  %v4128_v8 = vadd.f32 %v2853_v24, %v1657_v40 }
 0x3b4   :  { %v5522_v15 = vadd.f32 %v4126_v6, %v4093_v58  ;;  %v3156_v35 = vmul.f32 %v5518_v27, %v5518_v27 }
 0x3b5   :  { %v5524_v21 = vadd.f32 %v4128_v8, %v3055_v43  ;;  %v3154_v18 = vmul.f32 %v5520_v7, %v5520_v7 }
 0x3b6   :  { %v3157_v61 = vmul.f32 %v5522_v15, %v5522_v15 }
 0x3b7   :  { %v3133_v20 = vadd.f32 %v5524_v21, %v5520_v7  ;;  %v3155_v38 = vmul.f32 %v5524_v21, %v5524_v21  ;;  %v4064_v32 = vpop.f32.mrb[4].mxu1 }
 0x3b8   :  { %v4130_v17 = vadd.f32 %v4064_v32, %v3872_v44  ;;  %v2866_v42 = vpop.f32.mrb[5].mxu1 }
 0x3b9   :  { %v3134_v1 = vadd.f32 %v5518_v27, %v3133_v20  ;;  %v3170_v3 = vadd.f32 %v3155_v38, %v3154_v18  ;;  %v4132_v19 = vadd.f32 %v2866_v42, %v1670_v54  ;;  %v4065_v31 = vpop.f32.mrb[6].mxu1 }
 0x3ba   :  { %v5537_v45 = vadd.f32 %v4130_v17, %v4096_v34  ;;  %v4134_v47 = vadd.f32 %v4065_v31, %v3873_v48  ;;  %v2869_v22 = vpop.f32.mrb[7].mxu1 }
 0x3bb   :  { %v3171_v0 = vadd.f32 %v3170_v3, %v3156_v35  ;;  %v5539_v53 = vadd.f32 %v4132_v19, %v3068_v4  ;;  %v3135_v59 = vadd.f32 %v5522_v15, %v3134_v1  ;;  %v4136_v62 = vadd.f32 %v2869_v22, %v1673_v46 }
 0x3bc   :  { %v5542_v51 = vadd.f32 %v4134_v47, %v4097_v11  ;;  %v3160_v29 = vmul.f32 %v5537_v45, %v5537_v45 }
 0x3bd   :  { %v3136_v28 = vadd.f32 %v5539_v53, %v3135_v59  ;;  %v3158_v12 = vmul.f32 %v5539_v53, %v5539_v53  ;;  %v3172_v5 = vadd.f32 %v3171_v0, %v3157_v61  ;;  %v5547_v50 = vadd.f32 %v4136_v62, %v3071_v52 }
 0x3be   :  { %v3161_v10 = vmul.f32 %v5542_v51, %v5542_v51 }
 0x3bf   :  { %v3173_v56 = vadd.f32 %v3172_v5, %v3158_v12  ;;  %v3137_v30 = vadd.f32 %v5547_v50, %v3136_v28  ;;  %v3159_v16 = vmul.f32 %v5547_v50, %v5547_v50 }
 0x3c1   :  { %v3174_v23 = vadd.f32 %v3173_v56, %v3159_v16  ;;  %v3138_v14 = vadd.f32 %v5537_v45, %v3137_v30 }
 0x3c3   :  { %v3139_v40 = vadd.f32 %v5542_v51, %v3138_v14  ;;  %v3175_v44 = vadd.f32 %v3174_v23, %v3160_v29 }
 0x3c5   :  { %v3176_v54 = vadd.f32 %v3175_v44, %v3161_v10 }
 0x3cf   :  { %v4100_v48 = vpop.f32.mrb[8].mxu1 }
 0x3d0   :  { %v5559_v46 = vadd.f32 %v4100_v48, %v5502_v39  ;;  %v3084_v57 = vpop.f32.mrb[9].mxu1 }
 0x3d1   :  { %v5562_v13 = vadd.f32 %v3084_v57, %v5504_v41  ;;  %v4101_v58 = vpop.f32.mrb[10].mxu1 }
 0x3d2   :  { %v5565_v43 = vadd.f32 %v4101_v58, %v5506_v55  ;;  %v3087_v34 = vpop.f32.mrb[11].mxu1  ;;  %v3164_v36 = vmul.f32 %v5559_v46, %v5559_v46 }
 0x3d3   :  { %v3140_v4 = vadd.f32 %v5562_v13, %v3139_v40  ;;  %v3162_v11 = vmul.f32 %v5562_v13, %v5562_v13  ;;  %v5571_v52 = vadd.f32 %v3087_v34, %v5508_v9 }
 0x3d4   :  { %v3165_v9 = vmul.f32 %v5565_v43, %v5565_v43 }
 0x3d5   :  { %v3177_v25 = vadd.f32 %v3176_v54, %v3162_v11  ;;  %v3141_v39 = vadd.f32 %v5571_v52, %v3140_v4  ;;  %v3163_v41 = vmul.f32 %v5571_v52, %v5571_v52 }
 0x3d7   :  { %v3142_v55 = vadd.f32 %v5559_v46, %v3141_v39  ;;  %v3178_v63 = vadd.f32 %v3177_v25, %v3163_v41  ;;  %v4104_v49 = vpop.f32.mrb[12].mxu1 }
 0x3d8   :  { %v5580_v26 = vadd.f32 %v4104_v49, %v5510_v60  ;;  %v3100_v6 = vpop.f32.mrb[13].mxu1  ;;  %v3480_v49 = vld [vmem:[#allocation12] ss:$0 sm:$0xff] }
 0x3d9   :  { %v3179_v24 = vadd.f32 %v3178_v63, %v3164_v36  ;;  %v5585_v8 = vadd.f32 %v3100_v6, %v5512_v33  ;;  %v3143_v18 = vadd.f32 %v5565_v43, %v3142_v55  ;;  %v4105_v20 = vpop.f32.mrb[14].mxu1 }
 0x3da   :  { %v5589_v38 = vadd.f32 %v4105_v20, %v5514_v37  ;;  %v3103_v32 = vpop.f32.mrb[15].mxu1  ;;  %v3168_v33 = vmul.f32 %v5580_v26, %v5580_v26 }
 0x3db   :  { %v3144_v17 = vadd.f32 %v5585_v8, %v3143_v18  ;;  %v3166_v60 = vmul.f32 %v5585_v8, %v5585_v8  ;;  %v3180_v42 = vadd.f32 %v3179_v24, %v3165_v9  ;;  %v4145_v35 = vadd.f32 %v3103_v32, %v5516_v2 }
 0x3dc   :  { %v3169_v37 = vmul.f32 %v5589_v38, %v5589_v38 }
 0x3dd   :  { %v3181_v1 = vadd.f32 %v3180_v42, %v3166_v60  ;;  %v3145_v3 = vadd.f32 %v4145_v35, %v3144_v17  ;;  %v3167_v19 = vmul.f32 %v4145_v35, %v4145_v35 }
 0x3df   :  { %v3146_v31 = vadd.f32 %v5580_v26, %v3145_v3  ;;  %v3182_v61 = vadd.f32 %v3181_v1, %v3167_v19 }
 0x3e1   :  { %v3147_v47 = vadd.f32 %v5589_v38, %v3146_v31  ;;  %v3183_v22 = vadd.f32 %v3182_v61, %v3168_v33 }
 0x3e3   :  { %v3148_v0 = vrot.slane %v3147_v47, 4  ;;  %v3184_v59 = vadd.f32 %v3183_v22, %v3169_v37 }
 0x3e5   :  { %v3149_v62 = vadd.f32 %v3148_v0, %v3147_v47  ;;  %v3185_v28 = vrot.slane %v3184_v59, 4 }
 0x3e7   :  { %v3150_v2 = vrot.slane %v3149_v62, 2  ;;  %v3186_v12 = vadd.f32 %v3185_v28, %v3184_v59 }
 0x3e9   :  { %v3151_v5 = vadd.f32 %v3150_v2, %v3149_v62  ;;  %v3187_v56 = vrot.slane %v3186_v12, 2 }
 0x3eb   :  { %v3152_v30 = vrot.slane %v3151_v5, 1  ;;  %v3188_v16 = vadd.f32 %v3187_v56, %v3186_v12 }
 0x3ed   :  { %v3153_v29 = vadd.f32 %v3152_v30, %v3151_v5  ;;  %v3189_v23 = vrot.slane %v3188_v16, 1 }
 0x3ef   :  { %v3190_v14 = vadd.f32 %v3189_v23, %v3188_v16  ;;  %v3191_v10 = vmul.f32 0.0078125, %v3153_v29 }
 0x3f1   :  { %v3192_v40 = vmul.f32 0.0078125, %v3190_v14  ;;  %v3193_v44 = vmul.f32 %v3191_v10, %v3191_v10  ;;  %v3209_v54 = vsub.f32 %v4145_v35, %v3191_v10  ;;  %v3196_v48 = vsub.f32 %v5520_v7, %v3191_v10 }
 0x3f2   :  { %v3197_v57 = vsub.f32 %v5524_v21, %v3191_v10  ;;  %v3198_v58 = vsub.f32 %v5518_v27, %v3191_v10  ;;  %v3199_v34 = vsub.f32 %v5522_v15, %v3191_v10  ;;  %v3200_v4 = vsub.f32 %v5539_v53, %v3191_v10 }
 0x3f3   :  { %v3194_v11 = vsub.f32 %v3192_v40, %v3193_v44  ;;  %v3201_v25 = vsub.f32 %v5547_v50, %v3191_v10  ;;  %v3202_v39 = vsub.f32 %v5537_v45, %v3191_v10  ;;  %v3203_v41 = vsub.f32 %v5542_v51, %v3191_v10 }
 0x3f4   :  { %v3204_v36 = vsub.f32 %v5562_v13, %v3191_v10  ;;  %v3205_v55 = vsub.f32 %v5571_v52, %v3191_v10  ;;  %v3206_v7 = vsub.f32 %v5559_v46, %v3191_v10  ;;  %v3207_v21 = vsub.f32 %v5565_v43, %v3191_v10  ;;  %v3481_v52 = vld [vmem:[#allocation14] ss:$0 sm:$0xff] }
 0x3f5   :  { %v3195_v27 = vmax.f32 %v3194_v11, 0.0  ;;  %v3208_v15 = vsub.f32 %v5585_v8, %v3191_v10  ;;  %v3210_v53 = vsub.f32 %v5580_v26, %v3191_v10  ;;  %v3211_v63 = vsub.f32 %v5589_v38, %v3191_v10 }
 0x3f7   :  { %v3212_v50 = vadd.f32 1e-05, %v3195_v27 }
 0x3f9   :  { %4433 = vrsqrt.f32 %v3212_v50 }
 0x403   :  { %v4434_v45 = vpop.eup %4433 }
 0x404   :  { %v3227_v51 = vmul.f32 %v4434_v45, %v3209_v54  ;;  %v3214_v6 = vmul.f32 %v4434_v45, %v3196_v48  ;;  %v3215_v13 = vmul.f32 %v4434_v45, %v3197_v57  ;;  %v3216_v9 = vmul.f32 %v4434_v45, %v3198_v58 }
 0x405   :  { %v3217_v24 = vmul.f32 %v4434_v45, %v3199_v34  ;;  %v3218_v46 = vmul.f32 %v4434_v45, %v3200_v4  ;;  %v3219_v18 = vmul.f32 %v4434_v45, %v3201_v25  ;;  %v3220_v43 = vmul.f32 %v4434_v45, %v3202_v39 }
 0x406   :  { %v3249_v20 = vmul.f32 %v3480_v49, %v3227_v51  ;;  %v3221_v32 = vmul.f32 %v4434_v45, %v3203_v41  ;;  %v3222_v8 = vmul.f32 %v4434_v45, %v3204_v36  ;;  %v3223_v17 = vmul.f32 %v4434_v45, %v3205_v55 }
 0x407   :  { %v3224_v26 = vmul.f32 %v4434_v45, %v3206_v7  ;;  %v3225_v60 = vmul.f32 %v4434_v45, %v3207_v21  ;;  %v3226_v38 = vmul.f32 %v4434_v45, %v3208_v15  ;;  %v3228_v42 = vmul.f32 %v4434_v45, %v3210_v53 }
 0x408   :  { %v3271_v35 = vadd.f32 %v3481_v52, %v3249_v20  ;;  %v3229_v1 = vmul.f32 %v4434_v45, %v3211_v63  ;;  %v3236_v3 = vmul.f32 %v3480_v49, %v3214_v6  ;;  %v3237_v19 = vmul.f32 %v3480_v49, %v3215_v13 }
 0x409   :  { %v3238_v33 = vmul.f32 %v3480_v49, %v3216_v9  ;;  %v3239_v31 = vmul.f32 %v3480_v49, %v3217_v24  ;;  %v3240_v61 = vmul.f32 %v3480_v49, %v3218_v46  ;;  %v3241_v37 = vmul.f32 %v3480_v49, %v3219_v18 }
 0x40a   :  { %vm3287_vm1 = vcmp.ge.f32.partialorder %v3271_v35, 0.0  ;;  %v3303_v47 = vmul.f32 0.2, %v3271_v35  ;;  %v3242_v22 = vmul.f32 %v3480_v49, %v3220_v43  ;;  %v3243_v0 = vmul.f32 %v3480_v49, %v3221_v32 }
 0x40b   :  { %v3244_v59 = vmul.f32 %v3480_v49, %v3222_v8  ;;  %v3245_v62 = vmul.f32 %v3480_v49, %v3223_v17  ;;  %v3246_v28 = vmul.f32 %v3480_v49, %v3224_v26  ;;  %v3247_v2 = vmul.f32 %v3480_v49, %v3225_v60 }
 0x40c   :  { %v3319_v12 = vsel %vm3287_vm1, %v3271_v35, %v3303_v47  ;;  %v3248_v5 = vmul.f32 %v3480_v49, %v3226_v38  ;;  %v3250_v56 = vmul.f32 %v3480_v49, %v3228_v42  ;;  %v3251_v30 = vmul.f32 %v3480_v49, %v3229_v1 }
 0x40d   :  { %3335 = vst [vmem:[#allocation15 + $0x68] sm:$0xff] %v3319_v12  ;;  %v3258_v16 = vadd.f32 %v3481_v52, %v3236_v3  ;;  %v3259_v29 = vadd.f32 %v3481_v52, %v3237_v19  ;;  %v3260_v23 = vadd.f32 %v3481_v52, %v3238_v33  ;;  %v3261_v14 = vadd.f32 %v3481_v52, %v3239_v31 }
 0x40e   :  { %v3262_v10 = vadd.f32 %v3481_v52, %v3240_v61  ;;  %v3263_v40 = vadd.f32 %v3481_v52, %v3241_v37  ;;  %v3264_v44 = vadd.f32 %v3481_v52, %v3242_v22  ;;  %v3265_v54 = vadd.f32 %v3481_v52, %v3243_v0 }
 0x40f   :  { %v3266_v48 = vadd.f32 %v3481_v52, %v3244_v59  ;;  %v3267_v57 = vadd.f32 %v3481_v52, %v3245_v62  ;;  %v3268_v58 = vadd.f32 %v3481_v52, %v3246_v28  ;;  %v3269_v34 = vadd.f32 %v3481_v52, %v3247_v2 }
 0x410   :  { %v3270_v4 = vadd.f32 %v3481_v52, %v3248_v5  ;;  %v3272_v11 = vadd.f32 %v3481_v52, %v3250_v56  ;;  %v3273_v25 = vadd.f32 %v3481_v52, %v3251_v30  ;;  %vm3274_vm2 = vcmp.ge.f32.partialorder %v3258_v16, 0.0 }
 0x411   :  { %vm3275_vm3 = vcmp.ge.f32.partialorder %v3259_v29, 0.0  ;;  %vm3276_vm4 = vcmp.ge.f32.partialorder %v3260_v23, 0.0  ;;  %vm3277_vm5 = vcmp.ge.f32.partialorder %v3261_v14, 0.0  ;;  %vm3278_vm6 = vcmp.ge.f32.partialorder %v3262_v10, 0.0 }
 0x412   :  { %vm3279_vm7 = vcmp.ge.f32.partialorder %v3263_v40, 0.0  ;;  %vm3280_vm8 = vcmp.ge.f32.partialorder %v3264_v44, 0.0  ;;  %vm3281_vm9 = vcmp.ge.f32.partialorder %v3265_v54, 0.0  ;;  %vm3282_vm10 = vcmp.ge.f32.partialorder %v3266_v48, 0.0 }
 0x413   :  { %vm3283_vm11 = vcmp.ge.f32.partialorder %v3267_v57, 0.0  ;;  %vm3284_vm12 = vcmp.ge.f32.partialorder %v3268_v58, 0.0  ;;  %vm3285_vm13 = vcmp.ge.f32.partialorder %v3269_v34, 0.0  ;;  %vm3286_vm14 = vcmp.ge.f32.partialorder %v3270_v4, 0.0 }
 0x414   :  { %vm3288_vm15 = vcmp.ge.f32.partialorder %v3272_v11, 0.0  ;;  %vm3289_vm0 = vcmp.ge.f32.partialorder %v3273_v25, 0.0  ;;  %v3290_v39 = vmul.f32 0.2, %v3258_v16  ;;  %v3291_v41 = vmul.f32 0.2, %v3259_v29 }
 0x415   :  { %v3292_v36 = vmul.f32 0.2, %v3260_v23  ;;  %v3293_v55 = vmul.f32 0.2, %v3261_v14  ;;  %v3294_v7 = vmul.f32 0.2, %v3262_v10 }
 0x416   :  { %v3295_v21 = vmul.f32 0.2, %v3263_v40  ;;  %v3296_v27 = vmul.f32 0.2, %v3264_v44  ;;  %v3297_v15 = vmul.f32 0.2, %v3265_v54  ;;  %v3306_v53 = vsel %vm3274_vm2, %v3258_v16, %v3290_v39 }
 0x417   :  { %v3298_v63 = vmul.f32 0.2, %v3266_v48  ;;  %v3299_v50 = vmul.f32 0.2, %v3267_v57  ;;  %v3300_v45 = vmul.f32 0.2, %v3268_v58  ;;  %v3307_v49 = vsel %vm3275_vm3, %v3259_v29, %v3291_v41 }
 0x418   :  { %3322 = vst [vmem:[#allocation15] sm:$0xff] %v3306_v53  ;;  %v3301_v51 = vmul.f32 0.2, %v3269_v34  ;;  %v3302_v6 = vmul.f32 0.2, %v3270_v4  ;;  %v3308_v9 = vsel %vm3276_vm4, %v3260_v23, %v3292_v36  ;;  %3323 = vst [vmem:[#allocation15 + $0x8] sm:$0xff] %v3307_v49  ;;  %v3309_v24 = vsel %vm3277_vm5, %v3261_v14, %v3293_v55 }
 0x419   :  { %v3304_v13 = vmul.f32 0.2, %v3272_v11  ;;  %v3305_v52 = vmul.f32 0.2, %v3273_v25  ;;  %v3310_v46 = vsel %vm3278_vm6, %v3262_v10, %v3294_v7  ;;  %v3311_v18 = vsel %vm3279_vm7, %v3263_v40, %v3295_v21  ;;  %3324 = vst [vmem:[#allocation15 + $0x10] sm:$0xff] %v3308_v9  ;;  %3325 = vst [vmem:[#allocation15 + $0x18] sm:$0xff] %v3309_v24 }
 0x41a   :  { %v3312_v43 = vsel %vm3280_vm8, %v3264_v44, %v3296_v27  ;;  %v3313_v20 = vsel %vm3281_vm9, %v3265_v54, %v3297_v15  ;;  %v3314_v32 = vsel %vm3282_vm10, %v3266_v48, %v3298_v63  ;;  %v3315_v8 = vsel %vm3283_vm11, %v3267_v57, %v3299_v50  ;;  %3326 = vst [vmem:[#allocation15 + $0x20] sm:$0xff] %v3310_v46 }
 0x41b   :  { %3327 = vst [vmem:[#allocation15 + $0x28] sm:$0xff] %v3311_v18  ;;  %v3316_v17 = vsel %vm3284_vm12, %v3268_v58, %v3300_v45  ;;  %v3317_v26 = vsel %vm3285_vm13, %v3269_v34, %v3301_v51  ;;  %v3318_v60 = vsel %vm3286_vm14, %v3270_v4, %v3302_v6  ;;  %v3320_v38 = vsel %vm3288_vm15, %v3272_v11, %v3304_v13 }
 0x41c   :  { %3328 = vst [vmem:[#allocation15 + $0x30] sm:$0xff] %v3312_v43  ;;  %3329 = vst [vmem:[#allocation15 + $0x38] sm:$0xff] %v3313_v20  ;;  %v3321_v42 = vsel %vm3289_vm0, %v3273_v25, %v3305_v52 }
 0x41d   :  { %3330 = vst [vmem:[#allocation15 + $0x40] sm:$0xff] %v3314_v32  ;;  %3331 = vst [vmem:[#allocation15 + $0x48] sm:$0xff] %v3315_v8 }
 0x41e   :  { %3332 = vst [vmem:[#allocation15 + $0x50] sm:$0xff] %v3316_v17  ;;  %3333 = vst [vmem:[#allocation15 + $0x58] sm:$0xff] %v3317_v26 }
 0x41f   :  { %3334 = vst [vmem:[#allocation15 + $0x60] sm:$0xff] %v3318_v60  ;;  %3336 = vst [vmem:[#allocation15 + $0x70] sm:$0xff] %v3320_v38 }
 0x420   :  { %3337 = vst [vmem:[#allocation15 + $0x78] sm:$0xff] %v3321_v42 }
 0x421   :  { %4600 = shalt.err (!%p4597_p4)
}
 0x422   :  { %s4601_s18 = scalar_lea.hbm %s5653_s7, 2048 }
 0x423   :  { %p4602_p5 = scmp.ne.s32.totalorder %s5653_s7, %s4601_s18  ;;  %p4605_p6 = scmp.lt.u32.totalorder %s4601_s18, %s5653_s7 }
 0x425   :  { %p4607_p7 = pnand %p4605_p6, %p4602_p5 }
 0x427   :  { %4610 = shalt.err (!%p4607_p7)
}
 0x428   :  { %s4632_s23 = smov 128   ;;  %s4633_s24 = smov 8  }
 0x429   :  { %3349 = dma.vmem_to_hbm [thread:$0]  %s3344_s10, 2048, %s5653_s7, [#allocation5], %s4632_s23, %s4632_s23, %s4633_s24  }
 0x42a   :  { %4619 = dma.done.wait [#allocation5], 2048  }
 0x42b   :  { %4620 = vsyncadd [#allocation5], 4294965248 }
 0x42c   :  { %3353 = vsyncpa [#allocation4], 1 }
 0x42d   :  { %3354 = vsyncpa [#allocation7], 1 }
 0x42e   :  { %3355 = vsyncpa [#allocation10], 1 }
 0x42f   :  { %3356 = vsyncpa [#allocation13], 1 }
 0x430   :  { %3357 = vsyncpa [#allocation5], 1 }

</bundles_post_ra>
